<compile_context>
chip_gen: v7x
topology: tpu7x:2x2x1
jax: 0.10.0
libtpu: 0.0.40
codegen_flags: <defaults>
</compile_context>

<pallas_src>
import functools

import jax
import jax.numpy as jnp
from jax import lax
from jax.experimental import pallas as pl
from jax.experimental.pallas import tpu as pltpu


NUM_BRANCHES = 7
NUM_CHANNELS = 1280
HIDDEN = 512
OUT_PAD = 128          # class dim padded to one full lane register


# ----------------------------------------------------------------------------
# MobileNetV2 backbone (plain JAX, NHWC / HWIO, synthetic deterministic
# weights, BN folded to identity).  Static architecture config lives OUTSIDE
# the jitted params pytree.
# ----------------------------------------------------------------------------

_INVERTED_RESIDUAL_CFG = [
    # t, c, n, s
    (1, 16, 1, 1),
    (6, 24, 2, 2),
    (6, 32, 3, 2),
    (6, 64, 4, 2),
    (6, 96, 3, 1),
    (6, 160, 3, 2),
    (6, 320, 1, 1),
]


def _make_block_plan():
    plan = []
    in_c = 32
    for t, c, n, s in _INVERTED_RESIDUAL_CFG:
        for i in range(n):
            stride = s if i == 0 else 1
            plan.append({
                "in_c": in_c,
                "out_c": c,
                "hidden": in_c * t,
                "stride": stride,
                "expand": (t != 1),
                "use_res": (stride == 1 and in_c == c),
            })
            in_c = c
    return tuple(plan), in_c


_BLOCK_PLAN, _BACKBONE_LAST_IN = _make_block_plan()


def _conv2d(x, w, stride=1, padding=0, groups=1):
    return lax.conv_general_dilated(
        x, w,
        window_strides=(stride, stride),
        padding=((padding, padding), (padding, padding)),
        feature_group_count=groups,
        dimension_numbers=("NHWC", "HWIO", "NHWC"),
    )


def _relu6(x):
    return jnp.clip(x, 0.0, 6.0)


def _he_normal(key, shape, fan_in):
    return jax.random.normal(key, shape, jnp.float32) * jnp.sqrt(2.0 / fan_in)


def build_mobilenet_v2_params(key):
    n_keys = 2 + sum(2 + int(p["expand"]) for p in _BLOCK_PLAN)
    keys = iter(jax.random.split(key, n_keys))

    params = {"first_w": _he_normal(next(keys), (3, 3, 3, 32), 3 * 9)}
    blocks = []
    for p in _BLOCK_PLAN:
        blk = {}
        if p["expand"]:
            blk["expand_w"] = _he_normal(
                next(keys), (1, 1, p["in_c"], p["hidden"]), p["in_c"])
        blk["dw_w"] = _he_normal(next(keys), (3, 3, 1, p["hidden"]), 9)
        blk["proj_w"] = _he_normal(
            next(keys), (1, 1, p["hidden"], p["out_c"]), p["hidden"])
        blocks.append(blk)
    params["blocks"] = blocks
    params["last_w"] = _he_normal(
        next(keys), (1, 1, _BACKBONE_LAST_IN, NUM_CHANNELS), _BACKBONE_LAST_IN)
    return params


def mobilenet_v2_features(params, x_nhwc):
    # BN folded to identity (eval mode, synthetic gamma=1/beta=0/mean=0/var=1).
    y = _relu6(_conv2d(x_nhwc, params["first_w"], stride=2, padding=1))
    for plan, blk in zip(_BLOCK_PLAN, params["blocks"]):
        inp = y
        h = y
        if plan["expand"]:
            h = _relu6(_conv2d(h, blk["expand_w"]))
        h = _relu6(_conv2d(h, blk["dw_w"], stride=plan["stride"], padding=1,
                           groups=h.shape[-1]))
        h = _conv2d(h, blk["proj_w"])                            # linear proj
        y = inp + h if plan["use_res"] else h
    # Features emitted as bf16: halves feature HBM traffic into the head.
    return _relu6(_conv2d(y, params["last_w"])).astype(jnp.bfloat16)


# ----------------------------------------------------------------------------
# Pallas head kernel: GAP + branch MLP + sigmoid, gridded over the 7 branches.
# Weights streamed as int8 column tiles, dequantised in-kernel (bf16 MXU path,
# f32 accumulation, per-column scales applied to the accumulator).
# ----------------------------------------------------------------------------

def _head_kernel(x_ref, w1_ref, s1_ref, b1_ref, w2_ref, s2_ref, b2_ref, o_ref,
                 *, inv_hw):
    # Grid step j == branch j.
    # x_ref : (N, HW, 1280) bf16 — backbone features (same block every step,
    #                              kept VMEM-resident by the pipeline)
    # w1_ref: (1280, 512)   int8 — branch j's layer-1 weight column tile
    # s1_ref: (1, 512)      f32  — per-column dequant scales (layer 1)
    # b1_ref: (1, 512)      f32
    # w2_ref: (512, 128)    int8 — branch j's layer-2 weights (class dim padded)
    # s2_ref: (1, 128)      f32  — per-column dequant scales (layer 2)
    # b2_ref: (1, 128)      f32
    # o_ref : (N, 128)      f32  — branch j's lane-dense output slab

    # Global average pool: pure sum in f32; the 1/HW normalisation is folded
    # into the layer-1 dequant scale below.  Recomputed per step (40 KB of
    # VMEM-resident data) so the branch grid axis carries no state and can be
    # "parallel" (megacore-shardable on v7x).
    pooled = jnp.sum(x_ref[...].astype(jnp.float32), axis=1)           # (N, 1280)

    h = jnp.dot(pooled.astype(jnp.bfloat16),
                w1_ref[...].astype(jnp.bfloat16),
                preferred_element_type=jnp.float32)                    # (N, 512)
    h = jnp.maximum(h * (s1_ref[...] * inv_hw) + b1_ref[...], 0.0)     # dequant+ReLU

    z = jnp.dot(h.astype(jnp.bfloat16),
                w2_ref[...].astype(jnp.bfloat16),
                preferred_element_type=jnp.float32)                    # (N, 128)
    z = z * s2_ref[...] + b2_ref[...]

    # Sigmoid: divide goes to the EUP via approx reciprocal; clamp to [0, 1]
    # to cover the small approx error at saturation.
    sig = pl.reciprocal(1.0 + jnp.exp(-z), approx=True)
    o_ref[...] = jnp.clip(sig, 0.0, 1.0)


def eczemanet_head(feats_flat, w1q, s1, b1, w2q, s2, b2):
    n, hw, c = feats_flat.shape
    assert c == NUM_CHANNELS

    flops = (2 * n * c * NUM_BRANCHES * HIDDEN
             + 2 * n * NUM_BRANCHES * HIDDEN * OUT_PAD)
    bytes_accessed = (feats_flat.size * 2            # bf16 features
                      + w1q.size + w2q.size          # int8 weights
                      + (s1.size + b1.size + s2.size + b2.size) * 4
                      + n * NUM_BRANCHES * OUT_PAD * 4)

    kernel = functools.partial(_head_kernel, inv_hw=1.0 / hw)

    return pl.pallas_call(
        kernel,
        out_shape=jax.ShapeDtypeStruct((n, NUM_BRANCHES * OUT_PAD), jnp.float32),
        grid=(NUM_BRANCHES,),
        in_specs=[
            # features: constant block index -> fetched once, stays resident
            pl.BlockSpec((n, hw, c), lambda j: (0, 0, 0)),
            # layer-1 column tile for branch j (double-buffered by the pipeline)
            pl.BlockSpec((NUM_CHANNELS, HIDDEN), lambda j: (0, j)),
            pl.BlockSpec((1, HIDDEN), lambda j: (0, j)),                         # s1
            pl.BlockSpec((1, HIDDEN), lambda j: (0, j)),                         # b1
            pl.BlockSpec((pl.Squeezed(), HIDDEN, OUT_PAD), lambda j: (j, 0, 0)),  # w2
            pl.BlockSpec((pl.Squeezed(), 1, OUT_PAD), lambda j: (j, 0, 0)),       # s2
            pl.BlockSpec((pl.Squeezed(), 1, OUT_PAD), lambda j: (j, 0, 0)),       # b2
        ],
        out_specs=pl.BlockSpec((n, OUT_PAD), lambda j: (0, j)),
        compiler_params=pltpu.CompilerParams(
            dimension_semantics=("parallel",),
            vmem_limit_bytes=6 * 1024 * 1024),
        cost_estimate=pl.CostEstimate(
            flops=flops,
            transcendentals=n * NUM_BRANCHES * OUT_PAD,
            bytes_accessed=bytes_accessed),
    )(feats_flat, w1q, s1, b1, w2q, s2, b2)


# ----------------------------------------------------------------------------
# Full EczemaNet_New forward (ratio=False, ordinal=False; the Branch
# classifier in the reference module contains no dropout layer).
# ----------------------------------------------------------------------------

def _quantize_per_col(w):
    """Symmetric per-output-column int8 quantisation along the contraction axis."""
    amax = jnp.max(jnp.abs(w), axis=-2, keepdims=True)
    scale = jnp.maximum(amax, 1e-6) / 127.0
    wq = jnp.clip(jnp.round(w / scale), -127.0, 127.0).astype(jnp.int8)
    return wq, scale.astype(jnp.float32)


def build_eczemanet_params(key, num_classes):
    kb, k1, k2, k3, k4 = jax.random.split(key, 5)
    backbone = build_mobilenet_v2_params(kb)

    # PyTorch nn.Linear default init: U(-1/sqrt(fan_in), 1/sqrt(fan_in)).
    lim1 = 1.0 / jnp.sqrt(NUM_CHANNELS)
    lim2 = 1.0 / jnp.sqrt(HIDDEN)

    # Fused first layer across all 7 branches.
    w1 = jax.random.uniform(k1, (NUM_CHANNELS, NUM_BRANCHES * HIDDEN),
                            jnp.float32, -lim1, lim1)
    b1 = jax.random.uniform(k2, (1, NUM_BRANCHES * HIDDEN),
                            jnp.float32, -lim1, lim1)

    # Second layer per branch; class dim zero-padded to 128 (lane-dense output).
    w2 = jax.random.uniform(k3, (NUM_BRANCHES, HIDDEN, num_classes),
                            jnp.float32, -lim2, lim2)
    b2 = jax.random.uniform(k4, (NUM_BRANCHES, 1, num_classes),
                            jnp.float32, -lim2, lim2)
    w2 = jnp.pad(w2, ((0, 0), (0, 0), (0, OUT_PAD - num_classes)))
    b2 = jnp.pad(b2, ((0, 0), (0, 0), (0, OUT_PAD - num_classes)))

    # int8 weights + per-column f32 scales: halves the weight HBM stream on
    # every TPU generation; dequant happens in-kernel on the bf16 MXU path.
    w1q, s1 = _quantize_per_col(w1)      # (1280, 3584) int8, (1, 3584) f32
    w2q, s2 = _quantize_per_col(w2)      # (7, 512, 128) int8, (7, 1, 128) f32

    return {"backbone": backbone,
            "w1q": w1q, "s1": s1, "b1": b1,
            "w2q": w2q, "s2": s2, "b2": b2}


@functools.partial(jax.jit, static_argnames=("num_classes",))
def eczemanet_forward(params, x, num_classes):
    # x: (N, 3, H, W) as in the PyTorch module; go channels-last once up front.
    x_nhwc = jnp.transpose(x, (0, 2, 3, 1))
    feats = mobilenet_v2_features(params["backbone"], x_nhwc)   # (N, h, w, 1280) bf16
    n, h, w, c = feats.shape
    feats_flat = feats.reshape(n, h * w, c)                     # (N, HW, 1280)

    out_pad = eczemanet_head(feats_flat,
                             params["w1q"], params["s1"], params["b1"],
                             params["w2q"], params["s2"], params["b2"])  # (N, 7*128)
    out = out_pad.reshape(n, NUM_BRANCHES, OUT_PAD)[:, :, :num_classes]
    return out                                                  # (N, 7, K)


if __name__ == "__main__":
    num_classes = 6
    key = jax.random.PRNGKey(0)
    k_params, k_x = jax.random.split(key)
    params = build_eczemanet_params(k_params, num_classes)

    # Small input; MobileNetV2 reduces 64x64 -> 2x2 spatial before the pool.
    x = jax.random.normal(k_x, (2, 3, 64, 64), jnp.float32)

    out = eczemanet_forward(params, x, num_classes)
    out = jax.block_until_ready(out)

    assert out.shape == (2, NUM_BRANCHES, num_classes), out.shape
    assert bool(jnp.all(jnp.isfinite(out)))
    assert bool(jnp.all((out >= 0.0) & (out <= 1.0)))           # sigmoid range
    print("KERNEL_OK")
</pallas_src>

<mosaic_0001>
module attributes {stable_mosaic.version = 11 : i64} {
  func.func @_head_kernel(%arg0: i32, %arg1: memref<2x4x1280xbf16, #tpu.memory_space<vmem>>, %arg2: memref<1280x512xi8, #tpu.memory_space<vmem>>, %arg3: memref<1x512xf32, #tpu.memory_space<vmem>>, %arg4: memref<1x512xf32, #tpu.memory_space<vmem>>, %arg5: memref<1x512x128xi8, #tpu.memory_space<vmem>>, %arg6: memref<1x1x128xf32, #tpu.memory_space<vmem>>, %arg7: memref<1x1x128xf32, #tpu.memory_space<vmem>>, %arg8: memref<2x128xf32, #tpu.memory_space<vmem>>) attributes {dimension_semantics = [#tpu.dimension_semantics<parallel>], iteration_bounds = array<i64: 7>, scalar_prefetch = 0 : i64, scratch_operands = 0 : i64, tpu.core_type = #tpu.core_type<tc>, window_params = [{pipeline_mode = #tpu.pipeline_mode<synchronous>, transform_indices = @transform_0, window_bounds = array<i64: 2, 4, 1280>}, {transform_indices = @transform_1, window_bounds = array<i64: 1280, 512>}, {transform_indices = @transform_2, window_bounds = array<i64: 1, 512>}, {transform_indices = @transform_3, window_bounds = array<i64: 1, 512>}, {transform_indices = @transform_4, window_bounds = array<i64: 1, 512, 128>}, {transform_indices = @transform_5, window_bounds = array<i64: 1, 1, 128>}, {transform_indices = @transform_6, window_bounds = array<i64: 1, 1, 128>}, {transform_indices = @transform_7, window_bounds = array<i64: 2, 128>}]} {
    %c0 = arith.constant 0 : index
    %c0_0 = arith.constant 0 : index
    %c0_1 = arith.constant 0 : index
    %0 = vector.load %arg1[%c0, %c0_0, %c0_1] : memref<2x4x1280xbf16, #tpu.memory_space<vmem>>, vector<2x4x1280xbf16>
    %1 = arith.extf %0 : vector<2x4x1280xbf16> to vector<2x4x1280xf32>
    %cst = arith.constant dense<0.000000e+00> : vector<2x1280xf32>
    %2 = vector.multi_reduction <add>, %1, %cst [1] : vector<2x4x1280xf32> to vector<2x1280xf32>
    %3 = arith.truncf %2 : vector<2x1280xf32> to vector<2x1280xbf16>
    %c0_2 = arith.constant 0 : index
    %c0_3 = arith.constant 0 : index
    %4 = vector.load %arg2[%c0_2, %c0_3] : memref<1280x512xi8, #tpu.memory_space<vmem>>, vector<1280x512xi8>
    %5 = arith.sitofp %4 : vector<1280x512xi8> to vector<1280x512xbf16>
    %cst_4 = arith.constant dense<0.000000e+00> : vector<2x512xf32>
    %6 = tpu.matmul %3, %5, %cst_4 {dimension_numbers = #tpu.dot_dimension_numbers<[1], [0], [0], [1], [0, 0, 1, 1], [], []>} : vector<2x1280xbf16>, vector<1280x512xbf16>, vector<2x512xf32> -> vector<2x512xf32>
    %c0_5 = arith.constant 0 : index
    %c0_6 = arith.constant 0 : index
    %7 = vector.load %arg3[%c0_5, %c0_6] : memref<1x512xf32, #tpu.memory_space<vmem>>, vector<1x512xf32>
    %cst_7 = arith.constant 2.500000e-01 : f32
    %8 = vector.broadcast %cst_7 : f32 to vector<1x512xf32>
    %9 = arith.mulf %7, %8 : vector<1x512xf32>
    %10 = vector.broadcast %9 : vector<1x512xf32> to vector<2x512xf32>
    %11 = arith.mulf %6, %10 : vector<2x512xf32>
    %c0_8 = arith.constant 0 : index
    %c0_9 = arith.constant 0 : index
    %12 = vector.load %arg4[%c0_8, %c0_9] : memref<1x512xf32, #tpu.memory_space<vmem>>, vector<1x512xf32>
    %13 = vector.broadcast %12 : vector<1x512xf32> to vector<2x512xf32>
    %14 = arith.addf %11, %13 : vector<2x512xf32>
    %cst_10 = arith.constant 0.000000e+00 : f32
    %15 = vector.broadcast %cst_10 : f32 to vector<2x512xf32>
    %16 = arith.maximumf %14, %15 : vector<2x512xf32>
    %17 = arith.truncf %16 : vector<2x512xf32> to vector<2x512xbf16>
    %c0_11 = arith.constant 0 : index
    %c0_12 = arith.constant 0 : index
    %c0_13 = arith.constant 0 : index
    %18 = vector.load %arg5[%c0_11, %c0_12, %c0_13] : memref<1x512x128xi8, #tpu.memory_space<vmem>>, vector<1x512x128xi8>
    %19 = vector.shape_cast %18 : vector<1x512x128xi8> to vector<512x128xi8>
    %20 = arith.sitofp %19 : vector<512x128xi8> to vector<512x128xbf16>
    %cst_14 = arith.constant dense<0.000000e+00> : vector<2x128xf32>
    %21 = tpu.matmul %17, %20, %cst_14 {dimension_numbers = #tpu.dot_dimension_numbers<[1], [0], [0], [1], [0, 0, 1, 1], [], []>} : vector<2x512xbf16>, vector<512x128xbf16>, vector<2x128xf32> -> vector<2x128xf32>
    %c0_15 = arith.constant 0 : index
    %c0_16 = arith.constant 0 : index
    %c0_17 = arith.constant 0 : index
    %22 = vector.load %arg6[%c0_15, %c0_16, %c0_17] : memref<1x1x128xf32, #tpu.memory_space<vmem>>, vector<1x1x128xf32>
    %23 = vector.shape_cast %22 : vector<1x1x128xf32> to vector<1x128xf32>
    %24 = vector.broadcast %23 : vector<1x128xf32> to vector<2x128xf32>
    %25 = arith.mulf %21, %24 : vector<2x128xf32>
    %c0_18 = arith.constant 0 : index
    %c0_19 = arith.constant 0 : index
    %c0_20 = arith.constant 0 : index
    %26 = vector.load %arg7[%c0_18, %c0_19, %c0_20] : memref<1x1x128xf32, #tpu.memory_space<vmem>>, vector<1x1x128xf32>
    %27 = vector.shape_cast %26 : vector<1x1x128xf32> to vector<1x128xf32>
    %28 = vector.broadcast %27 : vector<1x128xf32> to vector<2x128xf32>
    %29 = arith.addf %25, %28 : vector<2x128xf32>
    %cst_21 = arith.constant 0.000000e+00 : f32
    %30 = vector.broadcast %cst_21 : f32 to vector<2x128xf32>
    %31 = arith.subf %30, %29 : vector<2x128xf32>
    %32 = math.exp %31 : vector<2x128xf32>
    %cst_22 = arith.constant 1.000000e+00 : f32
    %33 = vector.broadcast %cst_22 : f32 to vector<2x128xf32>
    %34 = arith.addf %33, %32 : vector<2x128xf32>
    %35 = tpu.reciprocal %34 {approx = true} : vector<2x128xf32> -> vector<2x128xf32>
    %cst_23 = arith.constant 0.000000e+00 : f32
    %cst_24 = arith.constant 1.000000e+00 : f32
    %36 = vector.broadcast %cst_23 : f32 to vector<2x128xf32>
    %37 = arith.maximumf %36, %35 : vector<2x128xf32>
    %38 = vector.broadcast %cst_24 : f32 to vector<2x128xf32>
    %39 = arith.minimumf %38, %37 : vector<2x128xf32>
    %c0_25 = arith.constant 0 : index
    %c0_26 = arith.constant 0 : index
    %40 = vector.load %arg8[%c0_25, %c0_26] : memref<2x128xf32, #tpu.memory_space<vmem>>, vector<2x128xf32>
    tpu.vector_store %arg8[%c0_25, %c0_26], %39 {strides = array<i32>} : memref<2x128xf32, #tpu.memory_space<vmem>>, vector<2x128xf32>,
    return
  }
  func.func @transform_0(%arg0: i32) -> (i32, i32, i32) {
    %c0_i32 = arith.constant 0 : i32
    %c0_i32_0 = arith.constant 0 : i32
    %c0_i32_1 = arith.constant 0 : i32
    %c0_i32_2 = arith.constant 0 : i32
    return %c0_i32, %c0_i32_0, %c0_i32_1 : i32, i32, i32
  }
  func.func @transform_1(%arg0: i32) -> (i32, i32) {
    %c0_i32 = arith.constant 0 : i32
    %c0_i32_0 = arith.constant 0 : i32
    return %c0_i32, %arg0 : i32, i32
  }
  func.func @transform_2(%arg0: i32) -> (i32, i32) {
    %c0_i32 = arith.constant 0 : i32
    %c0_i32_0 = arith.constant 0 : i32
    return %c0_i32, %arg0 : i32, i32
  }
  func.func @transform_3(%arg0: i32) -> (i32, i32) {
    %c0_i32 = arith.constant 0 : i32
    %c0_i32_0 = arith.constant 0 : i32
    return %c0_i32, %arg0 : i32, i32
  }
  func.func @transform_4(%arg0: i32) -> (i32, i32, i32) {
    %c0_i32 = arith.constant 0 : i32
    %c0_i32_0 = arith.constant 0 : i32
    %c0_i32_1 = arith.constant 0 : i32
    return %arg0, %c0_i32, %c0_i32_0 : i32, i32, i32
  }
  func.func @transform_5(%arg0: i32) -> (i32, i32, i32) {
    %c0_i32 = arith.constant 0 : i32
    %c0_i32_0 = arith.constant 0 : i32
    %c0_i32_1 = arith.constant 0 : i32
    return %arg0, %c0_i32, %c0_i32_0 : i32, i32, i32
  }
  func.func @transform_6(%arg0: i32) -> (i32, i32, i32) {
    %c0_i32 = arith.constant 0 : i32
    %c0_i32_0 = arith.constant 0 : i32
    %c0_i32_1 = arith.constant 0 : i32
    return %arg0, %c0_i32, %c0_i32_0 : i32, i32, i32
  }
  func.func @transform_7(%arg0: i32) -> (i32, i32) {
    %c0_i32 = arith.constant 0 : i32
    %c0_i32_0 = arith.constant 0 : i32
    return %c0_i32, %arg0 : i32, i32
  }
}

</mosaic_0001>

<bundles_post_ra>
// kernel: eczemanet_forward.1
= control target key start
LH: loop header
LB: loop body
LE: loop exit
PB: predicated region body
PF: predicated region fallthrough
CT: control target
= control target key end

     0   :  { %s2379_s24 = smov 0   ;;  %s2381_s25 = smov 0   ;;  %s3060_s0 = inlined_call_operand.vmem [shape: bf16[2,4,1280], index: 0, kind: input, shape index: {}]   ;;  %s3061_s1 = inlined_call_operand.vmem [shape: s8[1280,3584], index: 1, kind: input, shape index: {}]   ;;  %s3062_s2 = inlined_call_operand.vmem [shape: f32[1,3584], index: 2, kind: input, shape index: {}]   ;;  %s3063_s3 = inlined_call_operand.vmem [shape: f32[1,3584], index: 3, kind: input, shape index: {}]   ;;  %s3064_s4 = inlined_call_operand.vmem [shape: s8[7,512,128], index: 4, kind: input, shape index: {}]   ;;  %s3065_s5 = inlined_call_operand.vmem [shape: f32[7,1,128], index: 5, kind: input, shape index: {}]   ;;  %s3066_s6 = inlined_call_operand.vmem [shape: f32[7,1,128], index: 6, kind: input, shape index: {}]   ;;  %s3067_s7 = inlined_call_operand.vmem [shape: f32[2,896], index: 7, kind: output, shape index: {}]  }
   0x1   :  { %s2383_s26 = smov 0  }
   0x2 LB: > { %s2395_s27 = sadd.s32 4294967295, %s2337_s26   ;;  %s2398_s28 = sadd.s32 1, %s2337_s26   ;;  %s2337_s26 = sphi %s2383_s26, %s3070_s26   ;;  %s2333_s25 = sphi %s2381_s25, %s3069_s25   ;;  %s2329_s24 = sphi %s2379_s24, %s3068_s24  }
   0x3   : > { %s42_s29 = ssub.s32 %s2337_s26, %s2398_s28  ;;  %s45_s30 = sadd.s32 1, %s2333_s25 }
   0x4   : > { %p43_p0 = scmp.eq.s32.totalorder %s42_s29, 0  ;;  %p52_p1 = scmp.ne.s32.totalorder %s2333_s25, %s2329_s24 }
   0x5   : > { %p53_p2 = scmp.eq.s32.totalorder %s2337_s26, 0  ;;  %p2194_p4 = scmp.ge.s32.totalorder %s2337_s26, 7 }
   0x6   : > { %s2407_s8 = scalar_select %p43_p0, %s2333_s25, %s45_s30  }
   0x7   : > { %p54_p3 = por %p53_p2, %p52_p1  ;;  %237 = sbr.rel (%p2194_p4) target bundleno = 99 (0x63), region = 20 }
   0xe   : > { %240 = sbr.rel (!%p54_p3) target bundleno = 99 (0x63), region = 24  ;;  %s242_s9 = sand.u32 (%p54_p3), 1, %s2333_s25  }
   0xf   : > { %s2207_s10 = sshll.u32 (%p54_p3), %s2337_s26, 5  ;;  %s2285_s11 = smul.u32 (%p54_p3), 1280, %s242_s9 }
  0x10   : > { %s2415_s14 = scalar_lea.vmem (%p54_p3), %s3061_s1, %s2207_s10 }
  0x11   : > { %v260_v0 = vld [vmem:[%s2415_s14] sm:$0xff] (%p54_p3)  ;;  %v262_v1 = vld [vmem:[%s2415_s14 + $0x8] sm:$0xff] (%p54_p3)  ;;  %v264_v2 = vld [vmem:[%s2415_s14 + $0x10] sm:$0xff] (%p54_p3)  ;;  %s2423_s15 = scalar_lea.vmem (%p54_p3), [#allocation2], %s2285_s11 }
  0x12   : > { %v266_v3 = vld [vmem:[%s2415_s14 + $0x18] sm:$0xff] (%p54_p3)  ;;  %v268_v4 = vld [vmem:[%s2415_s14 + $0xe0] sm:$0xff] (%p54_p3)  ;;  %v270_v5 = vld [vmem:[%s2415_s14 + $0xe8] sm:$0xff] (%p54_p3)  ;;  %261 = vst [vmem:[%s2423_s15] sm:$0xff] (%p54_p3), %v260_v0 }
  0x13   : > { %263 = vst [vmem:[%s2423_s15 + $0x8] sm:$0xff] (%p54_p3), %v262_v1  ;;  %265 = vst [vmem:[%s2423_s15 + $0x10] sm:$0xff] (%p54_p3), %v264_v2  ;;  %v272_v6 = vld [vmem:[%s2415_s14 + $0xf0] sm:$0xff] (%p54_p3)  ;;  %v274_v7 = vld [vmem:[%s2415_s14 + $0xf8] sm:$0xff] (%p54_p3) }
  0x14   : > { %267 = vst [vmem:[%s2423_s15 + $0x18] sm:$0xff] (%p54_p3), %v266_v3  ;;  %269 = vst [vmem:[%s2423_s15 + $0x20] sm:$0xff] (%p54_p3), %v268_v4  ;;  %v276_v8 = vld [vmem:[%s2415_s14 + $0x1c0] sm:$0xff] (%p54_p3)  ;;  %v278_v9 = vld [vmem:[%s2415_s14 + $0x1c8] sm:$0xff] (%p54_p3) }
  0x15   : > { %271 = vst [vmem:[%s2423_s15 + $0x28] sm:$0xff] %v270_v5  ;;  %273 = vst [vmem:[%s2423_s15 + $0x30] sm:$0xff] %v272_v6  ;;  %v280_v10 = vld [vmem:[%s2415_s14 + $0x1d0] sm:$0xff]  ;;  %v282_v11 = vld [vmem:[%s2415_s14 + $0x1d8] sm:$0xff] }
  0x16   : > { %275 = vst [vmem:[%s2423_s15 + $0x38] sm:$0xff] %v274_v7  ;;  %277 = vst [vmem:[%s2423_s15 + $0x40] sm:$0xff] %v276_v8  ;;  %v284_v12 = vld [vmem:[%s2415_s14 + $0x2a0] sm:$0xff]  ;;  %v286_v13 = vld [vmem:[%s2415_s14 + $0x2a8] sm:$0xff] }
  0x17   : > { %279 = vst [vmem:[%s2423_s15 + $0x48] sm:$0xff] %v278_v9  ;;  %281 = vst [vmem:[%s2423_s15 + $0x50] sm:$0xff] %v280_v10  ;;  %v288_v14 = vld [vmem:[%s2415_s14 + $0x2b0] sm:$0xff]  ;;  %v290_v15 = vld [vmem:[%s2415_s14 + $0x2b8] sm:$0xff] }
  0x18   : > { %283 = vst [vmem:[%s2423_s15 + $0x58] sm:$0xff] %v282_v11  ;;  %285 = vst [vmem:[%s2423_s15 + $0x60] sm:$0xff] %v284_v12  ;;  %v292_v16 = vld [vmem:[%s2415_s14 + $0x380] sm:$0xff]  ;;  %v294_v17 = vld [vmem:[%s2415_s14 + $0x388] sm:$0xff] }
  0x19   : > { %287 = vst [vmem:[%s2423_s15 + $0x68] sm:$0xff] %v286_v13  ;;  %289 = vst [vmem:[%s2423_s15 + $0x70] sm:$0xff] %v288_v14  ;;  %v296_v18 = vld [vmem:[%s2415_s14 + $0x390] sm:$0xff]  ;;  %v298_v19 = vld [vmem:[%s2415_s14 + $0x398] sm:$0xff] }
  0x1a   : > { %291 = vst [vmem:[%s2423_s15 + $0x78] sm:$0xff] %v290_v15  ;;  %293 = vst [vmem:[%s2423_s15 + $0x80] sm:$0xff] %v292_v16  ;;  %v300_v20 = vld [vmem:[%s2415_s14 + $0x460] sm:$0xff]  ;;  %v302_v21 = vld [vmem:[%s2415_s14 + $0x468] sm:$0xff] }
  0x1b   : > { %295 = vst [vmem:[%s2423_s15 + $0x88] sm:$0xff] %v294_v17  ;;  %297 = vst [vmem:[%s2423_s15 + $0x90] sm:$0xff] %v296_v18  ;;  %v304_v22 = vld [vmem:[%s2415_s14 + $0x470] sm:$0xff]  ;;  %v306_v23 = vld [vmem:[%s2415_s14 + $0x478] sm:$0xff] }
  0x1c   : > { %299 = vst [vmem:[%s2423_s15 + $0x98] sm:$0xff] %v298_v19  ;;  %301 = vst [vmem:[%s2423_s15 + $0xa0] sm:$0xff] %v300_v20  ;;  %v308_v24 = vld [vmem:[%s2415_s14 + $0x540] sm:$0xff]  ;;  %v310_v25 = vld [vmem:[%s2415_s14 + $0x548] sm:$0xff] }
  0x1d   : > { %303 = vst [vmem:[%s2423_s15 + $0xa8] sm:$0xff] %v302_v21  ;;  %305 = vst [vmem:[%s2423_s15 + $0xb0] sm:$0xff] %v304_v22  ;;  %v312_v26 = vld [vmem:[%s2415_s14 + $0x550] sm:$0xff]  ;;  %v314_v27 = vld [vmem:[%s2415_s14 + $0x558] sm:$0xff] }
  0x1e   : > { %307 = vst [vmem:[%s2423_s15 + $0xb8] sm:$0xff] %v306_v23  ;;  %309 = vst [vmem:[%s2423_s15 + $0xc0] sm:$0xff] %v308_v24  ;;  %v316_v28 = vld [vmem:[%s2415_s14 + $0x620] sm:$0xff]  ;;  %v318_v29 = vld [vmem:[%s2415_s14 + $0x628] sm:$0xff] }
  0x1f   : > { %311 = vst [vmem:[%s2423_s15 + $0xc8] sm:$0xff] %v310_v25  ;;  %313 = vst [vmem:[%s2423_s15 + $0xd0] sm:$0xff] %v312_v26  ;;  %v320_v30 = vld [vmem:[%s2415_s14 + $0x630] sm:$0xff]  ;;  %v322_v31 = vld [vmem:[%s2415_s14 + $0x638] sm:$0xff] }
  0x20   : > { %315 = vst [vmem:[%s2423_s15 + $0xd8] sm:$0xff] %v314_v27  ;;  %317 = vst [vmem:[%s2423_s15 + $0xe0] sm:$0xff] %v316_v28  ;;  %v324_v32 = vld [vmem:[%s2415_s14 + $0x700] sm:$0xff]  ;;  %v326_v33 = vld [vmem:[%s2415_s14 + $0x708] sm:$0xff] }
  0x21   : > { %319 = vst [vmem:[%s2423_s15 + $0xe8] sm:$0xff] %v318_v29  ;;  %321 = vst [vmem:[%s2423_s15 + $0xf0] sm:$0xff] %v320_v30  ;;  %v328_v34 = vld [vmem:[%s2415_s14 + $0x710] sm:$0xff]  ;;  %v330_v35 = vld [vmem:[%s2415_s14 + $0x718] sm:$0xff] }
  0x22   : > { %323 = vst [vmem:[%s2423_s15 + $0xf8] sm:$0xff] %v322_v31  ;;  %325 = vst [vmem:[%s2423_s15 + $0x100] sm:$0xff] %v324_v32  ;;  %v332_v36 = vld [vmem:[%s2415_s14 + $0x7e0] sm:$0xff]  ;;  %v334_v37 = vld [vmem:[%s2415_s14 + $0x7e8] sm:$0xff] }
  0x23   : > { %327 = vst [vmem:[%s2423_s15 + $0x108] sm:$0xff] %v326_v33  ;;  %329 = vst [vmem:[%s2423_s15 + $0x110] sm:$0xff] %v328_v34  ;;  %v336_v38 = vld [vmem:[%s2415_s14 + $0x7f0] sm:$0xff]  ;;  %v338_v39 = vld [vmem:[%s2415_s14 + $0x7f8] sm:$0xff] }
  0x24   : > { %331 = vst [vmem:[%s2423_s15 + $0x118] sm:$0xff] %v330_v35  ;;  %333 = vst [vmem:[%s2423_s15 + $0x120] sm:$0xff] %v332_v36  ;;  %v340_v40 = vld [vmem:[%s2415_s14 + $0x8c0] sm:$0xff]  ;;  %v342_v41 = vld [vmem:[%s2415_s14 + $0x8c8] sm:$0xff] }
  0x25   : > { %335 = vst [vmem:[%s2423_s15 + $0x128] sm:$0xff] %v334_v37  ;;  %337 = vst [vmem:[%s2423_s15 + $0x130] sm:$0xff] %v336_v38  ;;  %v344_v42 = vld [vmem:[%s2415_s14 + $0x8d0] sm:$0xff]  ;;  %v346_v43 = vld [vmem:[%s2415_s14 + $0x8d8] sm:$0xff] }
  0x26   : > { %339 = vst [vmem:[%s2423_s15 + $0x138] sm:$0xff] %v338_v39  ;;  %341 = vst [vmem:[%s2423_s15 + $0x140] sm:$0xff] %v340_v40  ;;  %v348_v44 = vld [vmem:[%s2415_s14 + $0x9a0] sm:$0xff]  ;;  %v350_v45 = vld [vmem:[%s2415_s14 + $0x9a8] sm:$0xff] }
  0x27   : > { %343 = vst [vmem:[%s2423_s15 + $0x148] sm:$0xff] %v342_v41  ;;  %345 = vst [vmem:[%s2423_s15 + $0x150] sm:$0xff] %v344_v42  ;;  %v352_v46 = vld [vmem:[%s2415_s14 + $0x9b0] sm:$0xff]  ;;  %v354_v47 = vld [vmem:[%s2415_s14 + $0x9b8] sm:$0xff] }
  0x28   : > { %347 = vst [vmem:[%s2423_s15 + $0x158] sm:$0xff] %v346_v43  ;;  %349 = vst [vmem:[%s2423_s15 + $0x160] sm:$0xff] %v348_v44  ;;  %v356_v48 = vld [vmem:[%s2415_s14 + $0xa80] sm:$0xff]  ;;  %v358_v49 = vld [vmem:[%s2415_s14 + $0xa88] sm:$0xff] }
  0x29   : > { %351 = vst [vmem:[%s2423_s15 + $0x168] sm:$0xff] %v350_v45  ;;  %353 = vst [vmem:[%s2423_s15 + $0x170] sm:$0xff] %v352_v46  ;;  %v360_v50 = vld [vmem:[%s2415_s14 + $0xa90] sm:$0xff]  ;;  %v362_v51 = vld [vmem:[%s2415_s14 + $0xa98] sm:$0xff] }
  0x2a   : > { %355 = vst [vmem:[%s2423_s15 + $0x178] sm:$0xff] %v354_v47  ;;  %357 = vst [vmem:[%s2423_s15 + $0x180] sm:$0xff] %v356_v48  ;;  %v364_v52 = vld [vmem:[%s2415_s14 + $0xb60] sm:$0xff]  ;;  %v366_v53 = vld [vmem:[%s2415_s14 + $0xb68] sm:$0xff] }
  0x2b   : > { %359 = vst [vmem:[%s2423_s15 + $0x188] sm:$0xff] %v358_v49  ;;  %361 = vst [vmem:[%s2423_s15 + $0x190] sm:$0xff] %v360_v50  ;;  %v368_v54 = vld [vmem:[%s2415_s14 + $0xb70] sm:$0xff]  ;;  %v370_v55 = vld [vmem:[%s2415_s14 + $0xb78] sm:$0xff] }
  0x2c   : > { %363 = vst [vmem:[%s2423_s15 + $0x198] sm:$0xff] %v362_v51  ;;  %365 = vst [vmem:[%s2423_s15 + $0x1a0] sm:$0xff] %v364_v52  ;;  %v372_v56 = vld [vmem:[%s2415_s14 + $0xc40] sm:$0xff]  ;;  %v374_v57 = vld [vmem:[%s2415_s14 + $0xc48] sm:$0xff] }
  0x2d   : > { %367 = vst [vmem:[%s2423_s15 + $0x1a8] sm:$0xff] %v366_v53  ;;  %369 = vst [vmem:[%s2423_s15 + $0x1b0] sm:$0xff] %v368_v54  ;;  %v376_v58 = vld [vmem:[%s2415_s14 + $0xc50] sm:$0xff]  ;;  %v378_v59 = vld [vmem:[%s2415_s14 + $0xc58] sm:$0xff] }
  0x2e   : > { %371 = vst [vmem:[%s2423_s15 + $0x1b8] sm:$0xff] %v370_v55  ;;  %373 = vst [vmem:[%s2423_s15 + $0x1c0] sm:$0xff] %v372_v56  ;;  %v380_v60 = vld [vmem:[%s2415_s14 + $0xd20] sm:$0xff]  ;;  %v382_v61 = vld [vmem:[%s2415_s14 + $0xd28] sm:$0xff] }
  0x2f   : > { %375 = vst [vmem:[%s2423_s15 + $0x1c8] sm:$0xff] %v374_v57  ;;  %377 = vst [vmem:[%s2423_s15 + $0x1d0] sm:$0xff] %v376_v58  ;;  %v384_v62 = vld [vmem:[%s2415_s14 + $0xd30] sm:$0xff]  ;;  %v386_v63 = vld [vmem:[%s2415_s14 + $0xd38] sm:$0xff] }
  0x30   : > { %379 = vst [vmem:[%s2423_s15 + $0x1d8] sm:$0xff] %v378_v59  ;;  %381 = vst [vmem:[%s2423_s15 + $0x1e0] sm:$0xff] %v380_v60  ;;  %v388_v0 = vld [vmem:[%s2415_s14 + $0xe00] sm:$0xff]  ;;  %v390_v1 = vld [vmem:[%s2415_s14 + $0xe08] sm:$0xff] }
  0x31   : > { %383 = vst [vmem:[%s2423_s15 + $0x1e8] sm:$0xff] %v382_v61  ;;  %385 = vst [vmem:[%s2423_s15 + $0x1f0] sm:$0xff] %v384_v62  ;;  %v392_v2 = vld [vmem:[%s2415_s14 + $0xe10] sm:$0xff]  ;;  %v394_v3 = vld [vmem:[%s2415_s14 + $0xe18] sm:$0xff] }
  0x32   : > { %387 = vst [vmem:[%s2423_s15 + $0x1f8] sm:$0xff] %v386_v63  ;;  %389 = vst [vmem:[%s2423_s15 + $0x200] sm:$0xff] %v388_v0  ;;  %v396_v4 = vld [vmem:[%s2415_s14 + $0xee0] sm:$0xff]  ;;  %v398_v5 = vld [vmem:[%s2415_s14 + $0xee8] sm:$0xff] }
  0x33   : > { %391 = vst [vmem:[%s2423_s15 + $0x208] sm:$0xff] %v390_v1  ;;  %393 = vst [vmem:[%s2423_s15 + $0x210] sm:$0xff] %v392_v2  ;;  %v400_v6 = vld [vmem:[%s2415_s14 + $0xef0] sm:$0xff]  ;;  %v402_v7 = vld [vmem:[%s2415_s14 + $0xef8] sm:$0xff] }
  0x34   : > { %395 = vst [vmem:[%s2423_s15 + $0x218] sm:$0xff] %v394_v3  ;;  %397 = vst [vmem:[%s2423_s15 + $0x220] sm:$0xff] %v396_v4  ;;  %v404_v8 = vld [vmem:[%s2415_s14 + $0xfc0] sm:$0xff]  ;;  %v406_v9 = vld [vmem:[%s2415_s14 + $0xfc8] sm:$0xff] }
  0x35   : > { %399 = vst [vmem:[%s2423_s15 + $0x228] sm:$0xff] %v398_v5  ;;  %401 = vst [vmem:[%s2423_s15 + $0x230] sm:$0xff] %v400_v6  ;;  %v408_v10 = vld [vmem:[%s2415_s14 + $0xfd0] sm:$0xff]  ;;  %v410_v11 = vld [vmem:[%s2415_s14 + $0xfd8] sm:$0xff] }
  0x36   : > { %403 = vst [vmem:[%s2423_s15 + $0x238] sm:$0xff] %v402_v7  ;;  %405 = vst [vmem:[%s2423_s15 + $0x240] sm:$0xff] %v404_v8  ;;  %v412_v12 = vld [vmem:[%s2415_s14 + $0x10a0] sm:$0xff]  ;;  %v414_v13 = vld [vmem:[%s2415_s14 + $0x10a8] sm:$0xff] }
  0x37   : > { %407 = vst [vmem:[%s2423_s15 + $0x248] sm:$0xff] %v406_v9  ;;  %409 = vst [vmem:[%s2423_s15 + $0x250] sm:$0xff] %v408_v10  ;;  %v416_v14 = vld [vmem:[%s2415_s14 + $0x10b0] sm:$0xff]  ;;  %v418_v15 = vld [vmem:[%s2415_s14 + $0x10b8] sm:$0xff] }
  0x38   : > { %411 = vst [vmem:[%s2423_s15 + $0x258] sm:$0xff] %v410_v11  ;;  %413 = vst [vmem:[%s2423_s15 + $0x260] sm:$0xff] %v412_v12  ;;  %v420_v16 = vld [vmem:[%s2415_s14 + $0x1180] sm:$0xff]  ;;  %v422_v17 = vld [vmem:[%s2415_s14 + $0x1188] sm:$0xff] }
  0x39   : > { %415 = vst [vmem:[%s2423_s15 + $0x268] sm:$0xff] %v414_v13  ;;  %417 = vst [vmem:[%s2423_s15 + $0x270] sm:$0xff] %v416_v14  ;;  %v424_v18 = vld [vmem:[%s2415_s14 + $0x1190] sm:$0xff]  ;;  %v426_v19 = vld [vmem:[%s2415_s14 + $0x1198] sm:$0xff] }
  0x3a   : > { %419 = vst [vmem:[%s2423_s15 + $0x278] sm:$0xff] %v418_v15  ;;  %421 = vst [vmem:[%s2423_s15 + $0x280] sm:$0xff] %v420_v16  ;;  %v428_v20 = vld [vmem:[%s2415_s14 + $0x1260] sm:$0xff]  ;;  %v430_v21 = vld [vmem:[%s2415_s14 + $0x1268] sm:$0xff] }
  0x3b   : > { %423 = vst [vmem:[%s2423_s15 + $0x288] sm:$0xff] %v422_v17  ;;  %425 = vst [vmem:[%s2423_s15 + $0x290] sm:$0xff] %v424_v18  ;;  %v432_v22 = vld [vmem:[%s2415_s14 + $0x1270] sm:$0xff]  ;;  %v434_v23 = vld [vmem:[%s2415_s14 + $0x1278] sm:$0xff] }
  0x3c   : > { %427 = vst [vmem:[%s2423_s15 + $0x298] sm:$0xff] %v426_v19  ;;  %429 = vst [vmem:[%s2423_s15 + $0x2a0] sm:$0xff] %v428_v20  ;;  %v436_v24 = vld [vmem:[%s2415_s14 + $0x1340] sm:$0xff]  ;;  %v438_v25 = vld [vmem:[%s2415_s14 + $0x1348] sm:$0xff] }
  0x3d   : > { %431 = vst [vmem:[%s2423_s15 + $0x2a8] sm:$0xff] %v430_v21  ;;  %433 = vst [vmem:[%s2423_s15 + $0x2b0] sm:$0xff] %v432_v22  ;;  %v440_v26 = vld [vmem:[%s2415_s14 + $0x1350] sm:$0xff]  ;;  %v442_v27 = vld [vmem:[%s2415_s14 + $0x1358] sm:$0xff] }
  0x3e   : > { %435 = vst [vmem:[%s2423_s15 + $0x2b8] sm:$0xff] %v434_v23  ;;  %437 = vst [vmem:[%s2423_s15 + $0x2c0] sm:$0xff] %v436_v24  ;;  %v444_v28 = vld [vmem:[%s2415_s14 + $0x1420] sm:$0xff]  ;;  %v446_v29 = vld [vmem:[%s2415_s14 + $0x1428] sm:$0xff] }
  0x3f   : > { %439 = vst [vmem:[%s2423_s15 + $0x2c8] sm:$0xff] %v438_v25  ;;  %441 = vst [vmem:[%s2423_s15 + $0x2d0] sm:$0xff] %v440_v26  ;;  %v448_v30 = vld [vmem:[%s2415_s14 + $0x1430] sm:$0xff]  ;;  %v450_v31 = vld [vmem:[%s2415_s14 + $0x1438] sm:$0xff] }
  0x40   : > { %443 = vst [vmem:[%s2423_s15 + $0x2d8] sm:$0xff] %v442_v27  ;;  %445 = vst [vmem:[%s2423_s15 + $0x2e0] sm:$0xff] %v444_v28  ;;  %v452_v32 = vld [vmem:[%s2415_s14 + $0x1500] sm:$0xff]  ;;  %v454_v33 = vld [vmem:[%s2415_s14 + $0x1508] sm:$0xff] }
  0x41   : > { %447 = vst [vmem:[%s2423_s15 + $0x2e8] sm:$0xff] %v446_v29  ;;  %449 = vst [vmem:[%s2423_s15 + $0x2f0] sm:$0xff] %v448_v30  ;;  %v456_v34 = vld [vmem:[%s2415_s14 + $0x1510] sm:$0xff]  ;;  %v458_v35 = vld [vmem:[%s2415_s14 + $0x1518] sm:$0xff] }
  0x42   : > { %451 = vst [vmem:[%s2423_s15 + $0x2f8] sm:$0xff] %v450_v31  ;;  %453 = vst [vmem:[%s2423_s15 + $0x300] sm:$0xff] %v452_v32  ;;  %v460_v36 = vld [vmem:[%s2415_s14 + $0x15e0] sm:$0xff]  ;;  %v462_v37 = vld [vmem:[%s2415_s14 + $0x15e8] sm:$0xff] }
  0x43   : > { %455 = vst [vmem:[%s2423_s15 + $0x308] sm:$0xff] %v454_v33  ;;  %457 = vst [vmem:[%s2423_s15 + $0x310] sm:$0xff] %v456_v34  ;;  %v464_v38 = vld [vmem:[%s2415_s14 + $0x15f0] sm:$0xff]  ;;  %v466_v39 = vld [vmem:[%s2415_s14 + $0x15f8] sm:$0xff] }
  0x44   : > { %459 = vst [vmem:[%s2423_s15 + $0x318] sm:$0xff] %v458_v35  ;;  %461 = vst [vmem:[%s2423_s15 + $0x320] sm:$0xff] %v460_v36  ;;  %v468_v40 = vld [vmem:[%s2415_s14 + $0x16c0] sm:$0xff]  ;;  %v470_v41 = vld [vmem:[%s2415_s14 + $0x16c8] sm:$0xff] }
  0x45   : > { %463 = vst [vmem:[%s2423_s15 + $0x328] sm:$0xff] %v462_v37  ;;  %465 = vst [vmem:[%s2423_s15 + $0x330] sm:$0xff] %v464_v38  ;;  %v472_v42 = vld [vmem:[%s2415_s14 + $0x16d0] sm:$0xff]  ;;  %v474_v43 = vld [vmem:[%s2415_s14 + $0x16d8] sm:$0xff] }
  0x46   : > { %467 = vst [vmem:[%s2423_s15 + $0x338] sm:$0xff] %v466_v39  ;;  %469 = vst [vmem:[%s2423_s15 + $0x340] sm:$0xff] %v468_v40  ;;  %v476_v44 = vld [vmem:[%s2415_s14 + $0x17a0] sm:$0xff]  ;;  %v478_v45 = vld [vmem:[%s2415_s14 + $0x17a8] sm:$0xff] }
  0x47   : > { %471 = vst [vmem:[%s2423_s15 + $0x348] sm:$0xff] %v470_v41  ;;  %473 = vst [vmem:[%s2423_s15 + $0x350] sm:$0xff] %v472_v42  ;;  %v480_v46 = vld [vmem:[%s2415_s14 + $0x17b0] sm:$0xff]  ;;  %v482_v47 = vld [vmem:[%s2415_s14 + $0x17b8] sm:$0xff] }
  0x48   : > { %475 = vst [vmem:[%s2423_s15 + $0x358] sm:$0xff] %v474_v43  ;;  %477 = vst [vmem:[%s2423_s15 + $0x360] sm:$0xff] %v476_v44  ;;  %v484_v48 = vld [vmem:[%s2415_s14 + $0x1880] sm:$0xff]  ;;  %v486_v49 = vld [vmem:[%s2415_s14 + $0x1888] sm:$0xff] }
  0x49   : > { %479 = vst [vmem:[%s2423_s15 + $0x368] sm:$0xff] %v478_v45  ;;  %481 = vst [vmem:[%s2423_s15 + $0x370] sm:$0xff] %v480_v46  ;;  %v488_v50 = vld [vmem:[%s2415_s14 + $0x1890] sm:$0xff]  ;;  %v490_v51 = vld [vmem:[%s2415_s14 + $0x1898] sm:$0xff] }
  0x4a   : > { %483 = vst [vmem:[%s2423_s15 + $0x378] sm:$0xff] %v482_v47  ;;  %485 = vst [vmem:[%s2423_s15 + $0x380] sm:$0xff] %v484_v48  ;;  %v492_v52 = vld [vmem:[%s2415_s14 + $0x1960] sm:$0xff]  ;;  %v494_v53 = vld [vmem:[%s2415_s14 + $0x1968] sm:$0xff] }
  0x4b   : > { %487 = vst [vmem:[%s2423_s15 + $0x388] sm:$0xff] %v486_v49  ;;  %489 = vst [vmem:[%s2423_s15 + $0x390] sm:$0xff] %v488_v50  ;;  %v496_v54 = vld [vmem:[%s2415_s14 + $0x1970] sm:$0xff]  ;;  %v498_v55 = vld [vmem:[%s2415_s14 + $0x1978] sm:$0xff] }
  0x4c   : > { %491 = vst [vmem:[%s2423_s15 + $0x398] sm:$0xff] %v490_v51  ;;  %493 = vst [vmem:[%s2423_s15 + $0x3a0] sm:$0xff] %v492_v52  ;;  %v500_v56 = vld [vmem:[%s2415_s14 + $0x1a40] sm:$0xff]  ;;  %v502_v57 = vld [vmem:[%s2415_s14 + $0x1a48] sm:$0xff] }
  0x4d   : > { %495 = vst [vmem:[%s2423_s15 + $0x3a8] sm:$0xff] %v494_v53  ;;  %497 = vst [vmem:[%s2423_s15 + $0x3b0] sm:$0xff] %v496_v54  ;;  %v504_v58 = vld [vmem:[%s2415_s14 + $0x1a50] sm:$0xff]  ;;  %v506_v59 = vld [vmem:[%s2415_s14 + $0x1a58] sm:$0xff] }
  0x4e   : > { %499 = vst [vmem:[%s2423_s15 + $0x3b8] sm:$0xff] %v498_v55  ;;  %501 = vst [vmem:[%s2423_s15 + $0x3c0] sm:$0xff] %v500_v56  ;;  %v508_v60 = vld [vmem:[%s2415_s14 + $0x1b20] sm:$0xff]  ;;  %v510_v61 = vld [vmem:[%s2415_s14 + $0x1b28] sm:$0xff] }
  0x4f   : > { %503 = vst [vmem:[%s2423_s15 + $0x3c8] sm:$0xff] %v502_v57  ;;  %505 = vst [vmem:[%s2423_s15 + $0x3d0] sm:$0xff] %v504_v58  ;;  %v512_v62 = vld [vmem:[%s2415_s14 + $0x1b30] sm:$0xff]  ;;  %v514_v63 = vld [vmem:[%s2415_s14 + $0x1b38] sm:$0xff] }
  0x50   : > { %507 = vst [vmem:[%s2423_s15 + $0x3d8] sm:$0xff] %v506_v59  ;;  %509 = vst [vmem:[%s2423_s15 + $0x3e0] sm:$0xff] %v508_v60  ;;  %v516_v0 = vld [vmem:[%s2415_s14 + $0x1c00] sm:$0xff]  ;;  %v518_v1 = vld [vmem:[%s2415_s14 + $0x1c08] sm:$0xff] }
  0x51   : > { %511 = vst [vmem:[%s2423_s15 + $0x3e8] sm:$0xff] %v510_v61  ;;  %513 = vst [vmem:[%s2423_s15 + $0x3f0] sm:$0xff] %v512_v62  ;;  %v520_v2 = vld [vmem:[%s2415_s14 + $0x1c10] sm:$0xff]  ;;  %v522_v3 = vld [vmem:[%s2415_s14 + $0x1c18] sm:$0xff] }
  0x52   : > { %515 = vst [vmem:[%s2423_s15 + $0x3f8] sm:$0xff] %v514_v63  ;;  %517 = vst [vmem:[%s2423_s15 + $0x400] sm:$0xff] %v516_v0  ;;  %v524_v4 = vld [vmem:[%s2415_s14 + $0x1ce0] sm:$0xff]  ;;  %v526_v5 = vld [vmem:[%s2415_s14 + $0x1ce8] sm:$0xff] }
  0x53   : > { %519 = vst [vmem:[%s2423_s15 + $0x408] sm:$0xff] %v518_v1  ;;  %521 = vst [vmem:[%s2423_s15 + $0x410] sm:$0xff] %v520_v2  ;;  %v528_v6 = vld [vmem:[%s2415_s14 + $0x1cf0] sm:$0xff]  ;;  %v530_v7 = vld [vmem:[%s2415_s14 + $0x1cf8] sm:$0xff] }
  0x54   : > { %523 = vst [vmem:[%s2423_s15 + $0x418] sm:$0xff] %v522_v3  ;;  %525 = vst [vmem:[%s2423_s15 + $0x420] sm:$0xff] %v524_v4  ;;  %v532_v8 = vld [vmem:[%s2415_s14 + $0x1dc0] sm:$0xff]  ;;  %v534_v9 = vld [vmem:[%s2415_s14 + $0x1dc8] sm:$0xff] }
  0x55   : > { %527 = vst [vmem:[%s2423_s15 + $0x428] sm:$0xff] %v526_v5  ;;  %529 = vst [vmem:[%s2423_s15 + $0x430] sm:$0xff] %v528_v6  ;;  %v536_v10 = vld [vmem:[%s2415_s14 + $0x1dd0] sm:$0xff]  ;;  %v538_v11 = vld [vmem:[%s2415_s14 + $0x1dd8] sm:$0xff] }
  0x56   : > { %531 = vst [vmem:[%s2423_s15 + $0x438] sm:$0xff] %v530_v7  ;;  %533 = vst [vmem:[%s2423_s15 + $0x440] sm:$0xff] %v532_v8  ;;  %v540_v12 = vld [vmem:[%s2415_s14 + $0x1ea0] sm:$0xff]  ;;  %v542_v13 = vld [vmem:[%s2415_s14 + $0x1ea8] sm:$0xff] }
  0x57   : > { %535 = vst [vmem:[%s2423_s15 + $0x448] sm:$0xff] %v534_v9  ;;  %537 = vst [vmem:[%s2423_s15 + $0x450] sm:$0xff] %v536_v10  ;;  %v544_v14 = vld [vmem:[%s2415_s14 + $0x1eb0] sm:$0xff]  ;;  %v546_v15 = vld [vmem:[%s2415_s14 + $0x1eb8] sm:$0xff] }
  0x58   : > { %539 = vst [vmem:[%s2423_s15 + $0x458] sm:$0xff] %v538_v11  ;;  %541 = vst [vmem:[%s2423_s15 + $0x460] sm:$0xff] %v540_v12  ;;  %v548_v16 = vld [vmem:[%s2415_s14 + $0x1f80] sm:$0xff]  ;;  %v550_v17 = vld [vmem:[%s2415_s14 + $0x1f88] sm:$0xff] }
  0x59   : > { %543 = vst [vmem:[%s2423_s15 + $0x468] sm:$0xff] %v542_v13  ;;  %545 = vst [vmem:[%s2423_s15 + $0x470] sm:$0xff] %v544_v14  ;;  %v552_v18 = vld [vmem:[%s2415_s14 + $0x1f90] sm:$0xff]  ;;  %v554_v19 = vld [vmem:[%s2415_s14 + $0x1f98] sm:$0xff] }
  0x5a   : > { %547 = vst [vmem:[%s2423_s15 + $0x478] sm:$0xff] %v546_v15  ;;  %549 = vst [vmem:[%s2423_s15 + $0x480] sm:$0xff] %v548_v16  ;;  %v556_v20 = vld [vmem:[%s2415_s14 + $0x2060] sm:$0xff]  ;;  %v558_v21 = vld [vmem:[%s2415_s14 + $0x2068] sm:$0xff] }
  0x5b   : > { %551 = vst [vmem:[%s2423_s15 + $0x488] sm:$0xff] %v550_v17  ;;  %553 = vst [vmem:[%s2423_s15 + $0x490] sm:$0xff] %v552_v18  ;;  %v560_v22 = vld [vmem:[%s2415_s14 + $0x2070] sm:$0xff]  ;;  %v562_v23 = vld [vmem:[%s2415_s14 + $0x2078] sm:$0xff] }
  0x5c   : > { %555 = vst [vmem:[%s2423_s15 + $0x498] sm:$0xff] %v554_v19  ;;  %557 = vst [vmem:[%s2423_s15 + $0x4a0] sm:$0xff] %v556_v20  ;;  %v564_v24 = vld [vmem:[%s2415_s14 + $0x2140] sm:$0xff]  ;;  %v566_v25 = vld [vmem:[%s2415_s14 + $0x2148] sm:$0xff] }
  0x5d   : > { %559 = vst [vmem:[%s2423_s15 + $0x4a8] sm:$0xff] %v558_v21  ;;  %561 = vst [vmem:[%s2423_s15 + $0x4b0] sm:$0xff] %v560_v22  ;;  %v568_v26 = vld [vmem:[%s2415_s14 + $0x2150] sm:$0xff]  ;;  %v570_v27 = vld [vmem:[%s2415_s14 + $0x2158] sm:$0xff] }
  0x5e   : > { %563 = vst [vmem:[%s2423_s15 + $0x4b8] sm:$0xff] %v562_v23  ;;  %565 = vst [vmem:[%s2423_s15 + $0x4c0] sm:$0xff] %v564_v24  ;;  %v572_v28 = vld [vmem:[%s2415_s14 + $0x2220] sm:$0xff]  ;;  %v574_v29 = vld [vmem:[%s2415_s14 + $0x2228] sm:$0xff] }
  0x5f   : > { %567 = vst [vmem:[%s2423_s15 + $0x4c8] sm:$0xff] %v566_v25  ;;  %569 = vst [vmem:[%s2423_s15 + $0x4d0] sm:$0xff] %v568_v26  ;;  %v576_v30 = vld [vmem:[%s2415_s14 + $0x2230] sm:$0xff]  ;;  %v578_v31 = vld [vmem:[%s2415_s14 + $0x2238] sm:$0xff] }
  0x60   : > { %571 = vst [vmem:[%s2423_s15 + $0x4d8] sm:$0xff] %v570_v27  ;;  %573 = vst [vmem:[%s2423_s15 + $0x4e0] sm:$0xff] %v572_v28 }
  0x61   : > { %575 = vst [vmem:[%s2423_s15 + $0x4e8] sm:$0xff] %v574_v29  ;;  %577 = vst [vmem:[%s2423_s15 + $0x4f0] sm:$0xff] %v576_v30 }
  0x62   : > { %579 = vst [vmem:[%s2423_s15 + $0x4f8] sm:$0xff] %v578_v31 }
  0x63 PF: > { %p2197_p5 = scmp.ge.s32.totalorder %s2337_s26, 1  ;;  %p620_p6 = scmp.lt.s32.totalorder %s2337_s26, 8 }
  0x65   : > { %p621_p7 = pnand %p2197_p5, %p620_p6 }
  0x66   : > { %s627_s16 = sand.u32 (!%p621_p7), 1, %s2329_s24   ;;  %v2755_v50 = vld [vmem:[%s3060_s0] sm:$0xff] (!%p621_p7)  ;;  %v2760_v51 = vld [vmem:[%s3060_s0 + $0x14] sm:$0xff] (!%p621_p7)  ;;  %vm749_vm0 = vcmask (!%p621_p7), 1043456   ;;  %vm1430_vm1 = vcmask (!%p621_p7), 1041409   ;;  %p687_p8 = scmp.lt.s32.totalorder (!%p621_p7), %s2395_s27, 6 }
  0x67   : > { %624 = sbr.rel (%p621_p7) target bundleno = 906 (0x38a), region = 67  ;;  %v709_v56 = vunpack.c.l.bf16 (!%p621_p7), %v2755_v50  ;;  %v714_v57 = vunpack.c.l.bf16 (!%p621_p7), %v2760_v51  ;;  %s2198_s15 = sshll.u32 (!%p621_p7), %s2395_s27, 2 }
  0x68   : > { %s2286_s17 = smul.u32 (!%p621_p7), 1280, %s627_s16  ;;  %p678_p9 = scmp.lt.s32.totalorder (!%p621_p7), %s2198_s15, 27 }
  0x69   : > { %v729_v2 = vcombine.high (!%p621_p7), %v709_v56, %v709_v56  ;;  %v734_v3 = vcombine.high (!%p621_p7), %v714_v57, %v714_v57  ;;  %v750_v24 = vsel (!%p621_p7), %vm749_vm0, %v709_v56, 0.0  ;;  %v820_v25 = vsel (!%p621_p7), %vm749_vm0, %v714_v57, 0.0 }
  0x6a   : > { %s2742_s18 = scalar_lea.vmem (!%p621_p7), [#allocation2], %s2286_s17 }
  0x6b   : > { %v911_v32 = vld [vmem:[%s2742_s18 + $0x8] sm:$0xff] (!%p621_p7)  ;;  %v913_v33 = vld [vmem:[%s2742_s18 + $0x18] sm:$0xff] (!%p621_p7)  ;;  %v910_v34 = vld [vmem:[%s2742_s18] sm:$0xff] (!%p621_p7)  ;;  %v757_v8 = vsel (!%p621_p7), %vm749_vm0, %v729_v2, 0.0  ;;  %v827_v9 = vsel (!%p621_p7), %vm749_vm0, %v734_v3, 0.0 }
  0x6c   : > { %v1071_v35 = vunpack.c.l.s8.bf16 (!%p621_p7), %v911_v32  ;;  %v1075_v36 = vunpack.c.h.s8.bf16 (!%p621_p7), %v911_v32  ;;  %v1073_v37 = vunpack.c.l.s8.bf16 (!%p621_p7), %v913_v33  ;;  %v1077_v38 = vunpack.c.h.s8.bf16 (!%p621_p7), %v913_v33  ;;  %v912_v39 = vld [vmem:[%s2742_s18 + $0x10] sm:$0xff] (!%p621_p7)  ;;  %v915_v42 = vld [vmem:[%s2742_s18 + $0x28] sm:$0xff] (!%p621_p7)  ;;  %v917_v43 = vld [vmem:[%s2742_s18 + $0x38] sm:$0xff] (!%p621_p7) }
  0x6d   : > { %v1070_v40 = vunpack.c.l.s8.bf16 (!%p621_p7), %v910_v34  ;;  %v1072_v41 = vunpack.c.l.s8.bf16 (!%p621_p7), %v912_v39  ;;  %v1074_v44 = vunpack.c.h.s8.bf16 (!%p621_p7), %v910_v34  ;;  %v1076_v45 = vunpack.c.h.s8.bf16 (!%p621_p7), %v912_v39  ;;  %v914_v48 = vld [vmem:[%s2742_s18 + $0x20] sm:$0xff] (!%p621_p7)  ;;  %v916_v49 = vld [vmem:[%s2742_s18 + $0x30] sm:$0xff] (!%p621_p7)  ;;  %v919_v58 = vld [vmem:[%s2742_s18 + $0x48] sm:$0xff] (!%p621_p7) }
  0x6e   : > { %1461 = vmatprep.subr.bf16.mxu0 %v1071_v35  ;;  %1666 = vmatprep.subr.bf16.mxu1 %v1073_v37  ;;  %v1079_v46 = vunpack.c.l.s8.bf16 %v915_v42  ;;  %v1081_v47 = vunpack.c.l.s8.bf16 %v917_v43  ;;  %v1078_v52 = vunpack.c.l.s8.bf16 %v914_v48  ;;  %v1080_v53 = vunpack.c.l.s8.bf16 %v916_v49  ;;  %v921_v59 = vld [vmem:[%s2742_s18 + $0x58] sm:$0xff]  ;;  %v918_v0 = vld [vmem:[%s2742_s18 + $0x40] sm:$0xff]  ;;  %v920_v1 = vld [vmem:[%s2742_s18 + $0x50] sm:$0xff]  ;;  %s3001_s10 = scalar_select %p687_p8, %s2395_s27, 6 }
  0x6f   : > { %1462 = vmatpush1.bf16.msra.mxu0 %v1070_v40  ;;  %1667 = vmatpush1.bf16.msra.mxu1 %v1072_v41  ;;  %v1083_v54 = vunpack.c.h.s8.bf16 %v915_v42  ;;  %v1085_v55 = vunpack.c.h.s8.bf16 %v917_v43  ;;  %v1082_v60 = vunpack.c.h.s8.bf16 %v914_v48  ;;  %v1084_v61 = vunpack.c.h.s8.bf16 %v916_v49  ;;  %v923_v10 = vld [vmem:[%s2742_s18 + $0x68] sm:$0xff]  ;;  %v925_v11 = vld [vmem:[%s2742_s18 + $0x78] sm:$0xff]  ;;  %v922_v20 = vld [vmem:[%s2742_s18 + $0x60] sm:$0xff]  ;;  %s3072_s15 = smov (!%p678_p9, %s2198_s15), 27 }
  0x70   : > { %1463 = vmatprep.subr.bf16.mxu0 %v1075_v36  ;;  %1668 = vmatprep.subr.bf16.mxu1 %v1077_v38  ;;  %v1087_v62 = vunpack.c.l.s8.bf16 %v919_v58  ;;  %v1089_v63 = vunpack.c.l.s8.bf16 %v921_v59  ;;  %v1086_v4 = vunpack.c.l.s8.bf16 %v918_v0  ;;  %v1088_v5 = vunpack.c.l.s8.bf16 %v920_v1  ;;  %v924_v21 = vld [vmem:[%s2742_s18 + $0x70] sm:$0xff]  ;;  %v927_v32 = vld [vmem:[%s2742_s18 + $0x88] sm:$0xff]  ;;  %v929_v33 = vld [vmem:[%s2742_s18 + $0x98] sm:$0xff]  ;;  %s2208_s11 = sshll.u32 %s3001_s10, 7  ;;  %s685_s21 = scalar_lea.vmem %s3063_s3, %s3072_s15 }
  0x71   : > { %v1091_v6 = vunpack.c.h.s8.bf16 %v919_v58  ;;  %v1093_v7 = vunpack.c.h.s8.bf16 %v921_v59  ;;  %v758_v12 = vrot.slane %v757_v8, 4  ;;  %v828_v13 = vrot.slane %v827_v9, 4  ;;  %v926_v40 = vld [vmem:[%s2742_s18 + $0x80] sm:$0xff]  ;;  %v928_v41 = vld [vmem:[%s2742_s18 + $0x90] sm:$0xff]  ;;  %v931_v58 = vld [vmem:[%s2742_s18 + $0xa8] sm:$0xff]  ;;  %s3011_s14 = scalar_lea.vmem %s3064_s4, %s2208_s11  ;;  %s694_s23 = scalar_lea.vmem %s3065_s5, %s3001_s10 }
  0x72   : > { %v1090_v14 = vunpack.c.h.s8.bf16 %v918_v0  ;;  %v1092_v15 = vunpack.c.h.s8.bf16 %v920_v1  ;;  %v1095_v18 = vunpack.c.l.s8.bf16 %v923_v10  ;;  %v1097_v19 = vunpack.c.l.s8.bf16 %v925_v11  ;;  %v933_v59 = vld [vmem:[%s2742_s18 + $0xb8] sm:$0xff]  ;;  %s697_s29 = scalar_lea.vmem %s3066_s6, %s3001_s10  ;;  %s2202_s30 = sshll.u32 %s3001_s10, 1 }
  0x73   : > { %1464 = vmatpush1.bf16.msra.mxu0 %v1074_v44  ;;  %1669 = vmatpush1.bf16.msra.mxu1 %v1076_v45  ;;  %v759_v16 = vadd.f32 %v758_v12, %v757_v8  ;;  %v829_v17 = vadd.f32 %v828_v13, %v827_v9  ;;  %v1094_v26 = vunpack.c.l.s8.bf16 %v922_v20  ;;  %v1096_v27 = vunpack.c.l.s8.bf16 %v924_v21  ;;  %s701_s12 = scalar_lea.vmem %s3067_s7, %s2202_s30 }
  0x74   : > { %1465 = vmatprep.subr.bf16.mxu0 %v1079_v46  ;;  %1670 = vmatprep.subr.bf16.mxu1 %v1081_v47  ;;  %v1099_v30 = vunpack.c.h.s8.bf16 %v923_v10  ;;  %v1101_v31 = vunpack.c.h.s8.bf16 %v925_v11  ;;  %v751_v36 = vrot.slane %v750_v24, 4  ;;  %v821_v37 = vrot.slane %v820_v25, 4 }
  0x75   : > { %v760_v22 = vrot.slane %v759_v16, 2  ;;  %v830_v23 = vrot.slane %v829_v17, 2  ;;  %v1098_v38 = vunpack.c.h.s8.bf16 %v922_v20  ;;  %v1100_v39 = vunpack.c.h.s8.bf16 %v924_v21 }
  0x76   : > { %v1103_v44 = vunpack.c.l.s8.bf16 %v927_v32  ;;  %v1105_v45 = vunpack.c.l.s8.bf16 %v929_v33  ;;  %v1102_v48 = vunpack.c.l.s8.bf16 %v926_v40  ;;  %v1104_v49 = vunpack.c.l.s8.bf16 %v928_v41 }
  0x77   : > { %1466 = vmatpush1.bf16.msra.mxu0 %v1078_v52  ;;  %1671 = vmatpush1.bf16.msra.mxu1 %v1080_v53  ;;  %v761_v28 = vadd.f32 %v760_v22, %v759_v16  ;;  %v831_v29 = vadd.f32 %v830_v23, %v829_v17  ;;  %v1107_v56 = vunpack.c.h.s8.bf16 %v927_v32  ;;  %v1109_v57 = vunpack.c.h.s8.bf16 %v929_v33  ;;  %v935_v16 = vld [vmem:[%s2742_s18 + $0xc8] sm:$0xff]  ;;  %v937_v17 = vld [vmem:[%s2742_s18 + $0xd8] sm:$0xff] }
  0x78   : > { %1467 = vmatprep.subr.bf16.mxu0 %v1083_v54  ;;  %1672 = vmatprep.subr.bf16.mxu1 %v1085_v55  ;;  %v752_v54 = vadd.f32 %v751_v36, %v750_v24  ;;  %v822_v55 = vadd.f32 %v821_v37, %v820_v25  ;;  %v1106_v0 = vunpack.c.h.s8.bf16 %v926_v40  ;;  %v1108_v1 = vunpack.c.h.s8.bf16 %v928_v41  ;;  %v934_v24 = vld [vmem:[%s2742_s18 + $0xc0] sm:$0xff]  ;;  %v936_v25 = vld [vmem:[%s2742_s18 + $0xd0] sm:$0xff] }
  0x79   : > { %v762_v34 = vrot.slane %v761_v28, 1  ;;  %v832_v35 = vrot.slane %v831_v29, 1  ;;  %v1115_v12 = vunpack.c.h.s8.bf16 %v931_v58  ;;  %v1117_v13 = vunpack.c.h.s8.bf16 %v933_v59 }
  0x7a   : > { %v753_v2 = vrot.slane %v752_v54, 2  ;;  %v823_v3 = vrot.slane %v822_v55, 2  ;;  %v1118_v36 = vunpack.c.l.s8.bf16 %v934_v24  ;;  %v1120_v37 = vunpack.c.l.s8.bf16 %v936_v25 }
  0x7b   : > { %1468 = vmatpush1.bf16.msra.mxu0 %v1082_v60  ;;  %1673 = vmatpush1.bf16.msra.mxu1 %v1084_v61  ;;  %v763_v42 = vadd.f32 %v762_v34, %v761_v28  ;;  %v833_v43 = vadd.f32 %v832_v35, %v831_v29  ;;  %v710_v60 = vunpack.c.h.bf16 %v2755_v50  ;;  %v715_v61 = vunpack.c.h.bf16 %v2760_v51 }
  0x7c   : > { %1469 = vmatprep.subr.bf16.mxu0 %v1087_v62  ;;  %1674 = vmatprep.subr.bf16.mxu1 %v1089_v63  ;;  %v754_v10 = vadd.f32 %v753_v2, %v752_v54  ;;  %v824_v11 = vadd.f32 %v823_v3, %v822_v55  ;;  %v1122_v54 = vunpack.c.h.s8.bf16 %v934_v24  ;;  %v1124_v55 = vunpack.c.h.s8.bf16 %v936_v25 }
  0x7d   : > { %v891_v46 = vpack.c.bf16 %v763_v42, %v763_v42  ;;  %v901_v47 = vpack.c.bf16 %v833_v43, %v833_v43  ;;  %v730_v50 = vcombine.high %v710_v60, %v710_v60  ;;  %v735_v51 = vcombine.high %v715_v61, %v715_v61 }
  0x7e   : > { %v764_v22 = vsel %vm749_vm0, %v710_v60, 0.0  ;;  %v834_v23 = vsel %vm749_vm0, %v715_v61, 0.0 }
  0x7f   : > { %1470 = vmatpush1.bf16.msra.mxu0 %v1086_v4  ;;  %1675 = vmatpush1.bf16.msra.mxu1 %v1088_v5  ;;  %v1411_v52 = vunpack.c.l.b16 %v891_v46  ;;  %v1421_v53 = vunpack.c.l.b16 %v901_v47  ;;  %v1111_v4 = vunpack.c.l.s8.bf16 %v931_v58  ;;  %v1113_v5 = vunpack.c.l.s8.bf16 %v933_v59  ;;  %v938_v58 = vld [vmem:[%s2742_s18 + $0xe0] sm:$0xff]  ;;  %v940_v59 = vld [vmem:[%s2742_s18 + $0xf0] sm:$0xff] }
  0x80   : > { %1471 = vmatprep.subr.bf16.mxu0 %v1091_v6  ;;  %1676 = vmatprep.subr.bf16.mxu1 %v1093_v7  ;;  %v930_v6 = vld [vmem:[%s2742_s18 + $0xa0] sm:$0xff]  ;;  %v932_v7 = vld [vmem:[%s2742_s18 + $0xb0] sm:$0xff]  ;;  %v765_v28 = vrot.slane %v764_v22, 4  ;;  %v835_v29 = vrot.slane %v834_v23, 4 }
  0x81   : > { %v1432_v62 = vsel %vm1430_vm1, %v1421_v53, %v1411_v52  ;;  %v1110_v8 = vunpack.c.l.s8.bf16 %v930_v6  ;;  %v1112_v9 = vunpack.c.l.s8.bf16 %v932_v7 }
  0x82   : > { %v1442_v63 = vpack.c.b16 %v1432_v62, %v1432_v62  ;;  %v766_v34 = vadd.f32 %v765_v28, %v764_v22  ;;  %v836_v35 = vadd.f32 %v835_v29, %v834_v23 }
  0x83   : > { %1472 = vmatpush1.bf16.msra.mxu0 %v1090_v14  ;;  %1677 = vmatpush1.bf16.msra.mxu1 %v1092_v15  ;;  %v1114_v14 = vunpack.c.h.s8.bf16 %v930_v6  ;;  %v1116_v15 = vunpack.c.h.s8.bf16 %v932_v7  ;;  %v1126_v6 = vunpack.c.l.s8.bf16 %v938_v58  ;;  %v1128_v7 = vunpack.c.l.s8.bf16 %v940_v59 }
  0x84   : > { %1473 = vmatprep.subr.bf16.mxu0 %v1095_v18  ;;  %1678 = vmatprep.subr.bf16.mxu1 %v1097_v19  ;;  %v771_v18 = vsel %vm749_vm0, %v730_v50, 0.0  ;;  %v841_v19 = vsel %vm749_vm0, %v735_v51, 0.0  ;;  %v767_v42 = vrot.slane %v766_v34, 2  ;;  %v837_v43 = vrot.slane %v836_v35, 2 }
  0x85   : > { %1493 = vmatprep.mubr.bf16.mxu0 %v1442_v63  ;;  %1698 = vmatprep.mubr.bf16.mxu1 %v1442_v63  ;;  %v772_v20 = vrot.slane %v771_v18, 4  ;;  %v842_v21 = vrot.slane %v841_v19, 4 }
  0x86   : > { %v768_v52 = vadd.f32 %v767_v42, %v766_v34  ;;  %v838_v53 = vadd.f32 %v837_v43, %v836_v35  ;;  %v2811_v34 = vld [vmem:[%s3060_s0 + $0x8] sm:$0xff]  ;;  %v2816_v35 = vld [vmem:[%s3060_s0 + $0x1c] sm:$0xff] }
  0x87   : > { %1474 = vmatpush1.bf16.msra.mxu0 %v1094_v26  ;;  %1679 = vmatpush1.bf16.msra.mxu1 %v1096_v27  ;;  %v755_v26 = vrot.slane %v754_v10, 1  ;;  %v825_v27 = vrot.slane %v824_v11, 1  ;;  %v773_v32 = vadd.f32 %v772_v20, %v771_v18  ;;  %v843_v33 = vadd.f32 %v842_v21, %v841_v19 }
  0x88   : > { %1475 = vmatprep.subr.bf16.mxu0 %v1099_v30  ;;  %1680 = vmatprep.subr.bf16.mxu1 %v1101_v31  ;;  %v1119_v30 = vunpack.c.l.s8.bf16 %v935_v16  ;;  %v1121_v31 = vunpack.c.l.s8.bf16 %v937_v17  ;;  %v769_v62 = vrot.slane %v768_v52, 1  ;;  %v839_v63 = vrot.slane %v838_v53, 1 }
  0x89   : > { %v756_v40 = vadd.f32 %v755_v26, %v754_v10  ;;  %v826_v41 = vadd.f32 %v825_v27, %v824_v11  ;;  %v1130_v20 = vunpack.c.h.s8.bf16 %v938_v58  ;;  %v1132_v21 = vunpack.c.h.s8.bf16 %v940_v59  ;;  %v942_v26 = vld [vmem:[%s2742_s18 + $0x100] sm:$0xff]  ;;  %v944_v27 = vld [vmem:[%s2742_s18 + $0x110] sm:$0xff]  ;;  %v951_v59 = vld [vmem:[%s2742_s18 + $0x148] sm:$0xff] }
  0x8a   : > { %v2824_v42 = vunpack.c.l.bf16 %v2816_v35 }
  0x8b   : > { %1476 = vmatpush1.bf16.msra.mxu0 %v1098_v38  ;;  %1681 = vmatpush1.bf16.msra.mxu1 %v1100_v39  ;;  %v774_v38 = vrot.slane %v773_v32, 2  ;;  %v844_v39 = vrot.slane %v843_v33, 2  ;;  %v890_v60 = vpack.c.bf16 %v756_v40, %v756_v40  ;;  %v900_v61 = vpack.c.bf16 %v826_v41, %v826_v41 }
  0x8c   : > { %1477 = vmatprep.subr.bf16.mxu0 %v1103_v44  ;;  %1682 = vmatprep.subr.bf16.mxu1 %v1105_v45  ;;  %v1123_v44 = vunpack.c.h.s8.bf16 %v935_v16  ;;  %v1125_v45 = vunpack.c.h.s8.bf16 %v937_v17  ;;  %v1140_v40 = vunpack.c.h.s8.bf16 %v944_v27  ;;  %v2821_v41 = vunpack.c.l.bf16 %v2811_v34 }
  0x8d   : > { %v775_v46 = vadd.f32 %v774_v38, %v773_v32  ;;  %v845_v47 = vadd.f32 %v844_v39, %v843_v33  ;;  %v1138_v39 = vunpack.c.h.s8.bf16 %v942_v26 }
  0x8f   : > { %1478 = vmatpush1.bf16.msra.mxu0 %v1102_v48  ;;  %1683 = vmatpush1.bf16.msra.mxu1 %v1104_v49  ;;  %v939_v48 = vld [vmem:[%s2742_s18 + $0xe8] sm:$0xff]  ;;  %v941_v49 = vld [vmem:[%s2742_s18 + $0xf8] sm:$0xff] }
  0x90   : > { %1479 = vmatprep.subr.bf16.mxu0 %v1107_v56  ;;  %1684 = vmatprep.subr.bf16.mxu1 %v1109_v57  ;;  %v776_v56 = vrot.slane %v775_v46, 1  ;;  %v846_v57 = vrot.slane %v845_v47, 1 }
  0x92   : > { %v777_v2 = vadd.f32 %v776_v56, %v775_v46  ;;  %v847_v3 = vadd.f32 %v846_v57, %v845_v47  ;;  %v948_v46 = vld [vmem:[%s2742_s18 + $0x130] sm:$0xff]  ;;  %v778_v47 = vsel %vm749_vm0, %v2821_v41, 0.0 }
  0x93   : > { %1480 = vmatpush1.bf16.msra.mxu0 %v1106_v0  ;;  %1685 = vmatpush1.bf16.msra.mxu1 %v1108_v1  ;;  %v1127_v0 = vunpack.c.l.s8.bf16 %v939_v48  ;;  %v1129_v1 = vunpack.c.l.s8.bf16 %v941_v49 }
  0x94   : > { %1481 = vmatprep.subr.bf16.mxu0 %v1111_v4  ;;  %1686 = vmatprep.subr.bf16.mxu1 %v1113_v5  ;;  %v770_v4 = vadd.f32 %v769_v62, %v768_v52  ;;  %v840_v5 = vadd.f32 %v839_v63, %v838_v53  ;;  %v893_v50 = vpack.c.bf16 %v777_v2, %v777_v2 }
  0x95   : > { %v903_v51 = vpack.c.bf16 %v847_v3, %v847_v3  ;;  %v950_v3 = vld [vmem:[%s2742_s18 + $0x140] sm:$0xff] }
  0x96   : > { %v892_v10 = vpack.c.bf16 %v770_v4, %v770_v4  ;;  %v902_v11 = vpack.c.bf16 %v840_v5, %v840_v5  ;;  %v1413_v18 = vunpack.c.l.b16 %v893_v50  ;;  %v952_v4 = vld [vmem:[%s2742_s18 + $0x150] sm:$0xff] }
  0x97   : > { %1482 = vmatpush1.bf16.msra.mxu0 %v1110_v8  ;;  %1687 = vmatpush1.bf16.msra.mxu1 %v1112_v9  ;;  %v1410_v8 = vunpack.c.l.b16 %v890_v60  ;;  %v1420_v9 = vunpack.c.l.b16 %v900_v61  ;;  %v1423_v19 = vunpack.c.l.b16 %v903_v51  ;;  %v953_v60 = vld [vmem:[%s2742_s18 + $0x158] sm:$0xff]  ;;  %v1150_v51 = vunpack.c.l.s8.bf16 %v950_v3 }
  0x98   : > { %1483 = vmatprep.subr.bf16.mxu0 %v1115_v12  ;;  %1688 = vmatprep.subr.bf16.mxu1 %v1117_v13  ;;  %v1131_v12 = vunpack.c.h.s8.bf16 %v939_v48  ;;  %v1133_v13 = vunpack.c.h.s8.bf16 %v941_v49  ;;  %v1412_v16 = vunpack.c.l.b16 %v892_v10  ;;  %v1422_v17 = vunpack.c.l.b16 %v902_v11 }
  0x99   : > { %v1431_v22 = vsel %vm1430_vm1, %v1420_v9, %v1410_v8  ;;  %v1434_v29 = vsel %vm1430_vm1, %v1423_v19, %v1413_v18  ;;  %v848_v48 = vsel %vm749_vm0, %v2824_v42, 0.0  ;;  %v779_v49 = vrot.slane %v778_v47, 4 }
  0x9a   : > { %v2803_v23 = vsel %vm1430_vm1, %v1422_v17, %v1412_v16  ;;  %v1441_v28 = vpack.c.b16 %v1431_v22, %v1431_v22  ;;  %v1444_v38 = vpack.c.b16 %v1434_v29, %v1434_v29  ;;  %v849_v52 = vrot.slane %v848_v48, 4  ;;  %v956_v22 = vld [vmem:[%s2742_s18 + $0x170] sm:$0xff] }
  0x9b   : > { %1484 = vmatpush1.bf16.msra.mxu0 %v1114_v14  ;;  %1689 = vmatpush1.bf16.msra.mxu1 %v1116_v15  ;;  %v943_v14 = vld [vmem:[%s2742_s18 + $0x108] sm:$0xff]  ;;  %v945_v15 = vld [vmem:[%s2742_s18 + $0x118] sm:$0xff]  ;;  %v780_v57 = vadd.f32 %v779_v49, %v778_v47  ;;  %v1153_v2 = vunpack.c.l.s8.bf16 %v953_v60  ;;  %v1152_v8 = vunpack.c.l.s8.bf16 %v952_v4  ;;  %v1155_v9 = vunpack.c.h.s8.bf16 %v951_v59 }
  0x9c   : > { %1485 = vmatprep.subr.bf16.mxu0 %v1119_v30  ;;  %1690 = vmatprep.subr.bf16.mxu1 %v1121_v31  ;;  %v1135_v24 = vunpack.c.l.s8.bf16 %v943_v14  ;;  %v1137_v25 = vunpack.c.l.s8.bf16 %v945_v15  ;;  %v1134_v30 = vunpack.c.l.s8.bf16 %v942_v26  ;;  %v1136_v31 = vunpack.c.l.s8.bf16 %v944_v27 }
  0x9d   : > { %v1139_v32 = vunpack.c.h.s8.bf16 %v943_v14  ;;  %v1141_v33 = vunpack.c.h.s8.bf16 %v945_v15  ;;  %v850_v58 = vadd.f32 %v849_v52, %v848_v48  ;;  %v781_v61 = vrot.slane %v780_v57, 2  ;;  %v957_v14 = vld [vmem:[%s2742_s18 + $0x178] sm:$0xff] }
  0x9e   : > { %v1157_v10 = vunpack.c.h.s8.bf16 %v953_v60  ;;  %v1154_v17 = vunpack.c.h.s8.bf16 %v950_v3  ;;  %v1156_v18 = vunpack.c.h.s8.bf16 %v952_v4  ;;  %v731_v29 = vcombine.high %v2821_v41, %v2821_v41 }
  0x9f   : > { %1486 = vmatpush1.bf16.msra.mxu0 %v1118_v36  ;;  %1691 = vmatpush1.bf16.msra.mxu1 %v1120_v37  ;;  %v947_v36 = vld [vmem:[%s2742_s18 + $0x128] sm:$0xff]  ;;  %v949_v37 = vld [vmem:[%s2742_s18 + $0x138] sm:$0xff]  ;;  %v851_v62 = vrot.slane %v850_v58, 2  ;;  %v782_v5 = vadd.f32 %v781_v61, %v780_v57  ;;  %v962_v61 = vld [vmem:[%s2742_s18 + $0x1a0] sm:$0xff] }
  0xa0   : > { %1487 = vmatprep.subr.bf16.mxu0 %v1123_v44  ;;  %1692 = vmatprep.subr.bf16.mxu1 %v1125_v45  ;;  %v1143_v43 = vunpack.c.l.s8.bf16 %v947_v36  ;;  %v1145_v44 = vunpack.c.l.s8.bf16 %v949_v37  ;;  %v946_v45 = vld [vmem:[%s2742_s18 + $0x120] sm:$0xff]  ;;  %v1149_v56 = vunpack.c.h.s8.bf16 %v949_v37 }
  0xa1   : > { %v1142_v53 = vunpack.c.l.s8.bf16 %v946_v45  ;;  %v1146_v63 = vunpack.c.h.s8.bf16 %v946_v45 }
  0xa3   : > { %1488 = vmatpush1.bf16.msra.mxu0 %v1122_v54  ;;  %1693 = vmatpush1.bf16.msra.mxu1 %v1124_v55  ;;  %v1144_v54 = vunpack.c.l.s8.bf16 %v948_v46  ;;  %v1147_v55 = vunpack.c.h.s8.bf16 %v947_v36  ;;  %v961_v36 = vld [vmem:[%s2742_s18 + $0x198] sm:$0xff] }
  0xa4   : > { %1489 = vmatprep.subr.bf16.mxu0 %v1127_v0  ;;  %1694 = vmatprep.subr.bf16.mxu1 %v1129_v1  ;;  %v1148_v0 = vunpack.c.h.s8.bf16 %v948_v46  ;;  %v1151_v1 = vunpack.c.l.s8.bf16 %v951_v59  ;;  %v1173_v52 = vunpack.c.h.s8.bf16 %v961_v36 }
  0xa7   : > { %1490 = vmatpush1.bf16.msra.mxu0 %v1126_v6  ;;  %1695 = vmatpush1.bf16.msra.mxu1 %v1128_v7  ;;  %v852_v6 = vadd.f32 %v851_v62, %v850_v58  ;;  %v783_v7 = vrot.slane %v782_v5, 1  ;;  %v964_v62 = vld [vmem:[%s2742_s18 + $0x1b0] sm:$0xff] }
  0xa8   : > { %1491 = vmatprep.subr.bf16.mxu0 %v1131_v12  ;;  %1696 = vmatprep.subr.bf16.mxu1 %v1133_v13  ;;  %v955_v13 = vld [vmem:[%s2742_s18 + $0x168] sm:$0xff] }
  0xa9   : > { %v853_v50 = vrot.slane %v852_v6, 1  ;;  %v784_v11 = vadd.f32 %v783_v7, %v782_v5  ;;  %v1159_v19 = vunpack.c.l.s8.bf16 %v955_v13  ;;  %v967_v5 = vld [vmem:[%s2742_s18 + $0x1c8] sm:$0xff]  ;;  %v966_v7 = vld [vmem:[%s2742_s18 + $0x1c0] sm:$0xff] }
  0xab   : > { %1492 = vmatpush1.bf16.msra.mxu0 %v1130_v20  ;;  %1697 = vmatpush1.bf16.msra.mxu1 %v1132_v21  ;;  %v854_v12 = vadd.f32 %v853_v50, %v852_v6  ;;  %v894_v15 = vpack.c.bf16 %v784_v11, %v784_v11  ;;  %v1161_v20 = vunpack.c.l.s8.bf16 %v957_v14  ;;  %v954_v21 = vld [vmem:[%s2742_s18 + $0x160] sm:$0xff]  ;;  %v969_v6 = vld [vmem:[%s2742_s18 + $0x1d8] sm:$0xff]  ;;  %v968_v50 = vld [vmem:[%s2742_s18 + $0x1d0] sm:$0xff]  ;;  %v1178_v11 = vunpack.c.h.s8.bf16 %v962_v61 }
  0xac   : > { %1502 = vmatprep.subr.bf16.mxu0 %v1135_v24  ;;  %1707 = vmatprep.subr.bf16.mxu1 %v1137_v25  ;;  %v1158_v27 = vunpack.c.l.s8.bf16 %v954_v21  ;;  %v1162_v37 = vunpack.c.h.s8.bf16 %v954_v21 }
  0xad   : > { %v904_v16 = vpack.c.bf16 %v854_v12, %v854_v12  ;;  %v1414_v24 = vunpack.c.l.b16 %v894_v15  ;;  %v1180_v12 = vunpack.c.h.s8.bf16 %v964_v62 }
  0xae   : > { %1494 = vmatmul.mubr.bf16.vlgmr.msra.gmra.mrb[0].mxu0 %v1441_v28  ;;  %1699 = vmatmul.mubr.bf16.vlgmr.msra.gmra.mrb[0].mxu1 %v1441_v28  ;;  %v1160_v28 = vunpack.c.l.s8.bf16 %v956_v22 }
  0xaf   : > { %1503 = vmatpush1.bf16.msra.mxu0 %v1134_v30  ;;  %1708 = vmatpush1.bf16.msra.mxu1 %v1136_v31  ;;  %v1424_v25 = vunpack.c.l.b16 %v904_v16  ;;  %v736_v30 = vcombine.high %v2824_v42, %v2824_v42  ;;  %v1163_v31 = vunpack.c.h.s8.bf16 %v955_v13  ;;  %v1169_v42 = vunpack.c.l.s8.bf16 %v961_v36 }
  0xb0   : > { %1504 = vmatprep.subr.bf16.mxu0 %v1139_v32  ;;  %1709 = vmatprep.subr.bf16.mxu1 %v1141_v33  ;;  %v1165_v32 = vunpack.c.h.s8.bf16 %v957_v14  ;;  %v959_v33 = vld [vmem:[%s2742_s18 + $0x188] sm:$0xff]  ;;  %v1183_v13 = vunpack.c.l.s8.bf16 %v967_v5  ;;  %v1185_v14 = vunpack.c.l.s8.bf16 %v969_v6 }
  0xb1   : > { %1534 = vmatprep.mubr.bf16.mxu0 %v1444_v38  ;;  %1739 = vmatprep.mubr.bf16.mxu1 %v1444_v38  ;;  %v2841_v26 = vsel %vm1430_vm1, %v1424_v25, %v1414_v24  ;;  %v1164_v38 = vunpack.c.h.s8.bf16 %v956_v22  ;;  %v1167_v41 = vunpack.c.l.s8.bf16 %v959_v33  ;;  %v1171_v49 = vunpack.c.h.s8.bf16 %v959_v33 }
  0xb3   : > { %1505 = vmatpush1.bf16.msra.mxu0 %v1138_v39  ;;  %1710 = vmatpush1.bf16.msra.mxu1 %v1140_v40  ;;  %v785_v39 = vsel %vm749_vm0, %v731_v29, 0.0  ;;  %v855_v40 = vsel %vm749_vm0, %v736_v30, 0.0 }
  0xb4   : > { %1506 = vmatprep.subr.bf16.mxu0 %v1143_v43  ;;  %1711 = vmatprep.subr.bf16.mxu1 %v1145_v44  ;;  %v958_v43 = vld [vmem:[%s2742_s18 + $0x180] sm:$0xff]  ;;  %v960_v44 = vld [vmem:[%s2742_s18 + $0x190] sm:$0xff]  ;;  %v786_v45 = vrot.slane %v785_v39, 4  ;;  %v856_v46 = vrot.slane %v855_v40, 4 }
  0xb5   : > { %v1166_v47 = vunpack.c.l.s8.bf16 %v958_v43  ;;  %v1168_v48 = vunpack.c.l.s8.bf16 %v960_v44  ;;  %v1170_v57 = vunpack.c.h.s8.bf16 %v958_v43  ;;  %v1172_v58 = vunpack.c.h.s8.bf16 %v960_v44 }
  0xb7   : > { %1507 = vmatpush1.bf16.msra.mxu0 %v1142_v53  ;;  %1712 = vmatpush1.bf16.msra.mxu1 %v1144_v54  ;;  %v963_v53 = vld [vmem:[%s2742_s18 + $0x1a8] sm:$0xff]  ;;  %v965_v54 = vld [vmem:[%s2742_s18 + $0x1b8] sm:$0xff] }
  0xb8   : > { %1508 = vmatprep.subr.bf16.mxu0 %v1147_v55  ;;  %1713 = vmatprep.subr.bf16.mxu1 %v1149_v56  ;;  %v787_v55 = vadd.f32 %v786_v45, %v785_v39  ;;  %v857_v56 = vadd.f32 %v856_v46, %v855_v40  ;;  %v1175_v59 = vunpack.c.l.s8.bf16 %v963_v53  ;;  %v1177_v60 = vunpack.c.l.s8.bf16 %v965_v54 }
  0xb9   : > { %v1179_v3 = vunpack.c.h.s8.bf16 %v963_v53  ;;  %v1181_v4 = vunpack.c.h.s8.bf16 %v965_v54 }
  0xbb   : > { %1509 = vmatpush1.bf16.msra.mxu0 %v1146_v63  ;;  %1714 = vmatpush1.bf16.msra.mxu1 %v1148_v0  ;;  %v788_v63 = vrot.slane %v787_v55, 2  ;;  %v858_v0 = vrot.slane %v857_v56, 2 }
  0xbc   : > { %1510 = vmatprep.subr.bf16.mxu0 %v1151_v1  ;;  %1715 = vmatprep.subr.bf16.mxu1 %v1153_v2  ;;  %v1174_v1 = vunpack.c.l.s8.bf16 %v962_v61  ;;  %v1176_v2 = vunpack.c.l.s8.bf16 %v964_v62 }
  0xbf   : > { %1511 = vmatpush1.bf16.msra.mxu0 %v1150_v51  ;;  %1716 = vmatpush1.bf16.msra.mxu1 %v1152_v8  ;;  %v789_v51 = vadd.f32 %v788_v63, %v787_v55  ;;  %v859_v8 = vadd.f32 %v858_v0, %v857_v56 }
  0xc0   : > { %1512 = vmatprep.subr.bf16.mxu0 %v1155_v9  ;;  %1717 = vmatprep.subr.bf16.mxu1 %v1157_v10  ;;  %v712_v9 = vunpack.c.h.bf16 %v2811_v34  ;;  %v717_v10 = vunpack.c.h.bf16 %v2816_v35 }
  0xc2   : > { %v732_v15 = vcombine.high %v712_v9, %v712_v9  ;;  %v737_v16 = vcombine.high %v717_v10, %v717_v10  ;;  %v792_v24 = vsel %vm749_vm0, %v712_v9, 0.0  ;;  %v862_v25 = vsel %vm749_vm0, %v717_v10, 0.0 }
  0xc3   : > { %1513 = vmatpush1.bf16.msra.mxu0 %v1154_v17  ;;  %1718 = vmatpush1.bf16.msra.mxu1 %v1156_v18  ;;  %v1182_v17 = vunpack.c.l.s8.bf16 %v966_v7  ;;  %v1184_v18 = vunpack.c.l.s8.bf16 %v968_v50  ;;  %v793_v29 = vrot.slane %v792_v24, 4  ;;  %v863_v30 = vrot.slane %v862_v25, 4 }
  0xc4   : > { %1514 = vmatprep.subr.bf16.mxu0 %v1159_v19  ;;  %1719 = vmatprep.subr.bf16.mxu1 %v1161_v20  ;;  %v790_v19 = vrot.slane %v789_v51, 1  ;;  %v860_v20 = vrot.slane %v859_v8, 1  ;;  %v799_v34 = vsel %vm749_vm0, %v732_v15, 0.0  ;;  %v869_v35 = vsel %vm749_vm0, %v737_v16, 0.0  ;;  %v974_v15 = vld [vmem:[%s2742_s18 + $0x200] sm:$0xff]  ;;  %v976_v16 = vld [vmem:[%s2742_s18 + $0x210] sm:$0xff] }
  0xc5   : > { %v800_v21 = vrot.slane %v799_v34, 4  ;;  %v870_v22 = vrot.slane %v869_v35, 4  ;;  %v794_v39 = vadd.f32 %v793_v29, %v792_v24  ;;  %v864_v40 = vadd.f32 %v863_v30, %v862_v25 }
  0xc6   : > { %v1198_v24 = vunpack.c.l.s8.bf16 %v974_v15  ;;  %v1200_v25 = vunpack.c.l.s8.bf16 %v976_v16 }
  0xc7   : > { %1515 = vmatpush1.bf16.msra.mxu0 %v1158_v27  ;;  %1720 = vmatpush1.bf16.msra.mxu1 %v1160_v28  ;;  %v1187_v27 = vunpack.c.h.s8.bf16 %v967_v5  ;;  %v1189_v28 = vunpack.c.h.s8.bf16 %v969_v6  ;;  %v801_v33 = vadd.f32 %v800_v21, %v799_v34  ;;  %v871_v36 = vadd.f32 %v870_v22, %v869_v35 }
  0xc8   : > { %1516 = vmatprep.subr.bf16.mxu0 %v1163_v31  ;;  %1721 = vmatprep.subr.bf16.mxu1 %v1165_v32  ;;  %v971_v31 = vld [vmem:[%s2742_s18 + $0x1e8] sm:$0xff]  ;;  %v973_v32 = vld [vmem:[%s2742_s18 + $0x1f8] sm:$0xff]  ;;  %v1443_v34 = vpack.c.b16 %v2803_v23, %v2803_v23 }
  0xc9   : > { %v802_v43 = vrot.slane %v801_v33, 2  ;;  %v872_v44 = vrot.slane %v871_v36, 2  ;;  %v1191_v45 = vunpack.c.l.s8.bf16 %v971_v31  ;;  %v1193_v46 = vunpack.c.l.s8.bf16 %v973_v32  ;;  %v979_v23 = vld [vmem:[%s2742_s18 + $0x228] sm:$0xff] }
  0xca   : > { %v1195_v63 = vunpack.c.h.s8.bf16 %v971_v31  ;;  %v1197_v0 = vunpack.c.h.s8.bf16 %v973_v32  ;;  %v981_v31 = vld [vmem:[%s2742_s18 + $0x238] sm:$0xff] }
  0xcb   : > { %1517 = vmatpush1.bf16.msra.mxu0 %v1162_v37  ;;  %1722 = vmatpush1.bf16.msra.mxu1 %v1164_v38  ;;  %v791_v37 = vadd.f32 %v790_v19, %v789_v51  ;;  %v861_v38 = vadd.f32 %v860_v20, %v859_v8  ;;  %v803_v53 = vadd.f32 %v802_v43, %v801_v33  ;;  %v1202_v33 = vunpack.c.h.s8.bf16 %v974_v15 }
  0xcc   : > { %1518 = vmatprep.subr.bf16.mxu0 %v1167_v41  ;;  %1723 = vmatprep.subr.bf16.mxu1 %v1169_v42  ;;  %v1186_v41 = vunpack.c.h.s8.bf16 %v966_v7  ;;  %v1188_v42 = vunpack.c.h.s8.bf16 %v968_v50  ;;  %v873_v54 = vadd.f32 %v872_v44, %v871_v36  ;;  %v1204_v36 = vunpack.c.h.s8.bf16 %v976_v16 }
  0xcd   : > { %v895_v55 = vpack.c.bf16 %v791_v37, %v791_v37  ;;  %v905_v56 = vpack.c.bf16 %v861_v38, %v861_v38  ;;  %v804_v61 = vrot.slane %v803_v53, 1  ;;  %v1207_v37 = vunpack.c.l.s8.bf16 %v979_v23 }
  0xce   : > { %v874_v62 = vrot.slane %v873_v54, 1  ;;  %v1209_v38 = vunpack.c.l.s8.bf16 %v981_v31  ;;  %v1211_v43 = vunpack.c.h.s8.bf16 %v979_v23  ;;  %v1213_v44 = vunpack.c.h.s8.bf16 %v981_v31  ;;  %v999_v23 = vld [vmem:[%s2742_s18 + $0x2c8] sm:$0xff]  ;;  %v1001_v31 = vld [vmem:[%s2742_s18 + $0x2d8] sm:$0xff] }
  0xcf   : > { %1519 = vmatpush1.bf16.msra.mxu0 %v1166_v47  ;;  %1724 = vmatpush1.bf16.msra.mxu1 %v1168_v48  ;;  %v970_v47 = vld [vmem:[%s2742_s18 + $0x1e0] sm:$0xff]  ;;  %v972_v48 = vld [vmem:[%s2742_s18 + $0x1f0] sm:$0xff]  ;;  %v805_v5 = vadd.f32 %v804_v61, %v803_v53  ;;  %v1415_v7 = vunpack.c.l.b16 %v895_v55  ;;  %v1425_v50 = vunpack.c.l.b16 %v905_v56 }
  0xd0   : > { %1520 = vmatprep.subr.bf16.mxu0 %v1171_v49  ;;  %1725 = vmatprep.subr.bf16.mxu1 %v1173_v52  ;;  %v795_v49 = vrot.slane %v794_v39, 2  ;;  %v865_v52 = vrot.slane %v864_v40, 2  ;;  %v875_v6 = vadd.f32 %v874_v62, %v873_v54  ;;  %v1194_v9 = vunpack.c.h.s8.bf16 %v970_v47  ;;  %v982_v53 = vld [vmem:[%s2742_s18 + $0x240] sm:$0xff]  ;;  %v984_v54 = vld [vmem:[%s2742_s18 + $0x250] sm:$0xff] }
  0xd1   : > { %v1196_v10 = vunpack.c.h.s8.bf16 %v972_v48  ;;  %v1436_v35 = vsel %vm1430_vm1, %v1425_v50, %v1415_v7  ;;  %v1214_v55 = vunpack.c.l.s8.bf16 %v982_v53  ;;  %v1216_v56 = vunpack.c.l.s8.bf16 %v984_v54  ;;  %v991_v7 = vld [vmem:[%s2742_s18 + $0x288] sm:$0xff]  ;;  %v993_v50 = vld [vmem:[%s2742_s18 + $0x298] sm:$0xff] }
  0xd2   : > { %v1446_v32 = vpack.c.b16 %v1436_v35, %v1436_v35  ;;  %v1218_v61 = vunpack.c.h.s8.bf16 %v982_v53  ;;  %v1220_v62 = vunpack.c.h.s8.bf16 %v984_v54  ;;  %v1235_v15 = vunpack.c.h.s8.bf16 %v991_v7  ;;  %v1003_v53 = vld [vmem:[%s2742_s18 + $0x2e8] sm:$0xff]  ;;  %v1005_v54 = vld [vmem:[%s2742_s18 + $0x2f8] sm:$0xff] }
  0xd3   : > { %1521 = vmatpush1.bf16.msra.mxu0 %v1170_v57  ;;  %1726 = vmatpush1.bf16.msra.mxu1 %v1172_v58  ;;  %v796_v57 = vadd.f32 %v795_v49, %v794_v39  ;;  %v866_v58 = vadd.f32 %v865_v52, %v864_v40  ;;  %v978_v39 = vld [vmem:[%s2742_s18 + $0x220] sm:$0xff]  ;;  %v980_v40 = vld [vmem:[%s2742_s18 + $0x230] sm:$0xff]  ;;  %v1237_v16 = vunpack.c.h.s8.bf16 %v993_v50 }
  0xd4   : > { %1522 = vmatprep.subr.bf16.mxu0 %v1175_v59  ;;  %1727 = vmatprep.subr.bf16.mxu1 %v1177_v60  ;;  %v1190_v59 = vunpack.c.l.s8.bf16 %v970_v47  ;;  %v1192_v60 = vunpack.c.l.s8.bf16 %v972_v48  ;;  %v1210_v47 = vunpack.c.h.s8.bf16 %v978_v39  ;;  %v1212_v48 = vunpack.c.h.s8.bf16 %v980_v40 }
  0xd7   : > { %1523 = vmatpush1.bf16.msra.mxu0 %v1174_v1  ;;  %1728 = vmatpush1.bf16.msra.mxu1 %v1176_v2  ;;  %v797_v1 = vrot.slane %v796_v57, 1  ;;  %v867_v2 = vrot.slane %v866_v58, 1 }
  0xd8   : > { %1524 = vmatprep.subr.bf16.mxu0 %v1179_v3  ;;  %1729 = vmatprep.subr.bf16.mxu1 %v1181_v4  ;;  %v975_v3 = vld [vmem:[%s2742_s18 + $0x208] sm:$0xff]  ;;  %v977_v4 = vld [vmem:[%s2742_s18 + $0x218] sm:$0xff] }
  0xd9   : > { %v798_v51 = vadd.f32 %v797_v1, %v796_v57  ;;  %v868_v8 = vadd.f32 %v867_v2, %v866_v58  ;;  %v1205_v29 = vunpack.c.h.s8.bf16 %v977_v4  ;;  %v986_v1 = vld [vmem:[%s2742_s18 + $0x260] sm:$0xff]  ;;  %v988_v2 = vld [vmem:[%s2742_s18 + $0x270] sm:$0xff] }
  0xdb   : > { %1525 = vmatpush1.bf16.msra.mxu0 %v1178_v11  ;;  %1730 = vmatpush1.bf16.msra.mxu1 %v1180_v12  ;;  %v897_v11 = vpack.c.bf16 %v805_v5, %v805_v5  ;;  %v907_v12 = vpack.c.bf16 %v875_v6, %v875_v6 }
  0xdc   : > { %1526 = vmatprep.subr.bf16.mxu0 %v1183_v13  ;;  %1731 = vmatprep.subr.bf16.mxu1 %v1185_v14  ;;  %v1199_v13 = vunpack.c.l.s8.bf16 %v975_v3  ;;  %v1201_v14 = vunpack.c.l.s8.bf16 %v977_v4  ;;  %v1224_v4 = vunpack.c.l.s8.bf16 %v988_v2 }
  0xdd   : > { %v1417_v19 = vunpack.c.l.b16 %v897_v11  ;;  %v1427_v20 = vunpack.c.l.b16 %v907_v12  ;;  %v990_v11 = vld [vmem:[%s2742_s18 + $0x280] sm:$0xff]  ;;  %v992_v12 = vld [vmem:[%s2742_s18 + $0x290] sm:$0xff] }
  0xdf   : > { %1527 = vmatpush1.bf16.msra.mxu0 %v1182_v17  ;;  %1732 = vmatpush1.bf16.msra.mxu1 %v1184_v18  ;;  %v896_v17 = vpack.c.bf16 %v798_v51, %v798_v51  ;;  %v906_v18 = vpack.c.bf16 %v868_v8, %v868_v8  ;;  %v1226_v51 = vunpack.c.h.s8.bf16 %v986_v1  ;;  %v1228_v8 = vunpack.c.h.s8.bf16 %v988_v2 }
  0xe0   : > { %1528 = vmatprep.subr.bf16.mxu0 %v1187_v27  ;;  %1733 = vmatprep.subr.bf16.mxu1 %v1189_v28  ;;  %v2879_v27 = vsel %vm1430_vm1, %v1427_v20, %v1417_v19  ;;  %v1203_v28 = vunpack.c.h.s8.bf16 %v975_v3  ;;  %v1222_v3 = vunpack.c.l.s8.bf16 %v986_v1  ;;  %v1234_v19 = vunpack.c.h.s8.bf16 %v990_v11 }
  0xe1   : > { %v1416_v21 = vunpack.c.l.b16 %v896_v17  ;;  %v1426_v22 = vunpack.c.l.b16 %v906_v18  ;;  %v995_v17 = vld [vmem:[%s2742_s18 + $0x2a8] sm:$0xff]  ;;  %v997_v18 = vld [vmem:[%s2742_s18 + $0x2b8] sm:$0xff]  ;;  %v1236_v20 = vunpack.c.h.s8.bf16 %v992_v12 }
  0xe2   : > { %v1241_v35 = vunpack.c.l.s8.bf16 %v997_v18 }
  0xe3   : > { %1529 = vmatpush1.bf16.msra.mxu0 %v1186_v41  ;;  %1734 = vmatpush1.bf16.msra.mxu1 %v1188_v42  ;;  %v2882_v30 = vsel %vm1430_vm1, %v1426_v22, %v1416_v21  ;;  %v1206_v41 = vunpack.c.l.s8.bf16 %v978_v39  ;;  %v1208_v42 = vunpack.c.l.s8.bf16 %v980_v40  ;;  %v994_v21 = vld [vmem:[%s2742_s18 + $0x2a0] sm:$0xff]  ;;  %v996_v22 = vld [vmem:[%s2742_s18 + $0x2b0] sm:$0xff] }
  0xe4   : > { %1530 = vmatprep.subr.bf16.mxu0 %v1191_v45  ;;  %1735 = vmatprep.subr.bf16.mxu1 %v1193_v46  ;;  %v983_v45 = vld [vmem:[%s2742_s18 + $0x248] sm:$0xff]  ;;  %v985_v46 = vld [vmem:[%s2742_s18 + $0x258] sm:$0xff]  ;;  %v998_v39 = vld [vmem:[%s2742_s18 + $0x2c0] sm:$0xff] }
  0xe5   : > { %v1215_v49 = vunpack.c.l.s8.bf16 %v983_v45  ;;  %v1217_v52 = vunpack.c.l.s8.bf16 %v985_v46  ;;  %v1219_v57 = vunpack.c.h.s8.bf16 %v983_v45  ;;  %v1221_v58 = vunpack.c.h.s8.bf16 %v985_v46  ;;  %v1000_v40 = vld [vmem:[%s2742_s18 + $0x2d0] sm:$0xff] }
  0xe6   : > { %v1246_v45 = vunpack.c.l.s8.bf16 %v998_v39  ;;  %v1248_v46 = vunpack.c.l.s8.bf16 %v1000_v40 }
  0xe7   : > { %1531 = vmatpush1.bf16.msra.mxu0 %v1190_v59  ;;  %1736 = vmatpush1.bf16.msra.mxu1 %v1192_v60  ;;  %v987_v59 = vld [vmem:[%s2742_s18 + $0x268] sm:$0xff]  ;;  %v989_v60 = vld [vmem:[%s2742_s18 + $0x278] sm:$0xff] }
  0xe8   : > { %1532 = vmatprep.subr.bf16.mxu0 %v1195_v63  ;;  %1737 = vmatprep.subr.bf16.mxu1 %v1197_v0  ;;  %v1223_v63 = vunpack.c.l.s8.bf16 %v987_v59  ;;  %v1225_v0 = vunpack.c.l.s8.bf16 %v989_v60  ;;  %v1227_v5 = vunpack.c.h.s8.bf16 %v987_v59  ;;  %v1229_v6 = vunpack.c.h.s8.bf16 %v989_v60 }
  0xeb   : > { %1533 = vmatpush1.bf16.msra.mxu0 %v1194_v9  ;;  %1738 = vmatpush1.bf16.msra.mxu1 %v1196_v10  ;;  %v1231_v9 = vunpack.c.l.s8.bf16 %v991_v7  ;;  %v1233_v10 = vunpack.c.l.s8.bf16 %v993_v50  ;;  %v1259_v7 = vunpack.c.h.s8.bf16 %v1003_v53  ;;  %v1261_v50 = vunpack.c.h.s8.bf16 %v1005_v54 }
  0xec   : > { %1543 = vmatprep.subr.bf16.mxu0 %v1199_v13  ;;  %1748 = vmatprep.subr.bf16.mxu1 %v1201_v14  ;;  %v1230_v13 = vunpack.c.l.s8.bf16 %v990_v11  ;;  %v1232_v14 = vunpack.c.l.s8.bf16 %v992_v12 }
  0xee   : > { %1535 = vmatmul.mubr.bf16.vlgmr.msra.gmra.mrb[0].mxu0 %v1443_v34  ;;  %1740 = vmatmul.mubr.bf16.vlgmr.msra.gmra.mrb[0].mxu1 %v1443_v34  ;;  %v1239_v34 = vunpack.c.l.s8.bf16 %v995_v17 }
  0xef   : > { %1544 = vmatpush1.bf16.msra.mxu0 %v1198_v24  ;;  %1749 = vmatpush1.bf16.msra.mxu1 %v1200_v25  ;;  %v1238_v24 = vunpack.c.l.s8.bf16 %v994_v21  ;;  %v1240_v25 = vunpack.c.l.s8.bf16 %v996_v22 }
  0xf0   : > { %1545 = vmatprep.subr.bf16.mxu0 %v1203_v28  ;;  %1750 = vmatprep.subr.bf16.mxu1 %v1205_v29  ;;  %v1243_v28 = vunpack.c.h.s8.bf16 %v995_v17  ;;  %v1245_v29 = vunpack.c.h.s8.bf16 %v997_v18  ;;  %v1006_v17 = vld [vmem:[%s2742_s18 + $0x300] sm:$0xff]  ;;  %v1008_v18 = vld [vmem:[%s2742_s18 + $0x310] sm:$0xff] }
  0xf1   : > { %1575 = vmatprep.mubr.bf16.mxu0 %v1446_v32  ;;  %1780 = vmatprep.mubr.bf16.mxu1 %v1446_v32  ;;  %v705_v32 = vld [vmem:[%s3060_s0 + $0x10] ss:$20 sps:$4 sm:$0xff]  }
  0xf3   : > { %1546 = vmatpush1.bf16.msra.mxu0 %v1202_v33  ;;  %1751 = vmatpush1.bf16.msra.mxu1 %v1204_v36  ;;  %v1242_v33 = vunpack.c.h.s8.bf16 %v994_v21  ;;  %v1244_v36 = vunpack.c.h.s8.bf16 %v996_v22  ;;  %v1264_v21 = vunpack.c.l.s8.bf16 %v1008_v18 }
  0xf4   : > { %1547 = vmatprep.subr.bf16.mxu0 %v1207_v37  ;;  %1752 = vmatprep.subr.bf16.mxu1 %v1209_v38  ;;  %v1247_v37 = vunpack.c.l.s8.bf16 %v999_v23  ;;  %v1249_v38 = vunpack.c.l.s8.bf16 %v1001_v31 }
  0xf7   : > { %1548 = vmatpush1.bf16.msra.mxu0 %v1206_v41  ;;  %1753 = vmatpush1.bf16.msra.mxu1 %v1208_v42  ;;  %v2911_v41 = vunpack.c.l.bf16 %v705_v32  ;;  %v2913_v42 = vunpack.c.h.bf16 %v705_v32 }
  0xf8   : > { %1549 = vmatprep.subr.bf16.mxu0 %v1211_v43  ;;  %1754 = vmatprep.subr.bf16.mxu1 %v1213_v44 }
  0xf9   : > { %v806_v43 = vsel %vm749_vm0, %v2911_v41, 0.0  ;;  %v876_v44 = vsel %vm749_vm0, %v2913_v42, 0.0 }
  0xfb   : > { %1550 = vmatpush1.bf16.msra.mxu0 %v1210_v47  ;;  %1755 = vmatpush1.bf16.msra.mxu1 %v1212_v48  ;;  %v807_v47 = vrot.slane %v806_v43, 4  ;;  %v877_v48 = vrot.slane %v876_v44, 4 }
  0xfc   : > { %1551 = vmatprep.subr.bf16.mxu0 %v1215_v49  ;;  %1756 = vmatprep.subr.bf16.mxu1 %v1217_v52  ;;  %v1251_v49 = vunpack.c.h.s8.bf16 %v999_v23  ;;  %v1253_v52 = vunpack.c.h.s8.bf16 %v1001_v31  ;;  %v1448_v23 = vpack.c.b16 %v2879_v27, %v2879_v27  ;;  %v1268_v31 = vunpack.c.h.s8.bf16 %v1008_v18 }
  0xff   : > { %1552 = vmatpush1.bf16.msra.mxu0 %v1214_v55  ;;  %1757 = vmatpush1.bf16.msra.mxu1 %v1216_v56  ;;  %v808_v55 = vadd.f32 %v807_v47, %v806_v43  ;;  %v878_v56 = vadd.f32 %v877_v48, %v876_v44  ;;  %v1015_v43 = vld [vmem:[%s2742_s18 + $0x348] sm:$0xff]  ;;  %v1017_v44 = vld [vmem:[%s2742_s18 + $0x358] sm:$0xff] }
 0x100   : > { %1553 = vmatprep.subr.bf16.mxu0 %v1219_v57  ;;  %1758 = vmatprep.subr.bf16.mxu1 %v1221_v58  ;;  %v1250_v57 = vunpack.c.h.s8.bf16 %v998_v39  ;;  %v1252_v58 = vunpack.c.h.s8.bf16 %v1000_v40  ;;  %v1279_v47 = vunpack.c.l.s8.bf16 %v1015_v43  ;;  %v1281_v48 = vunpack.c.l.s8.bf16 %v1017_v44 }
 0x101   : > { %v809_v59 = vrot.slane %v808_v55, 2  ;;  %v879_v60 = vrot.slane %v878_v56, 2 }
 0x103   : > { %1554 = vmatpush1.bf16.msra.mxu0 %v1218_v61  ;;  %1759 = vmatpush1.bf16.msra.mxu1 %v1220_v62  ;;  %v1255_v61 = vunpack.c.l.s8.bf16 %v1003_v53  ;;  %v1257_v62 = vunpack.c.l.s8.bf16 %v1005_v54  ;;  %v810_v1 = vadd.f32 %v809_v59, %v808_v55  ;;  %v880_v2 = vadd.f32 %v879_v60, %v878_v56 }
 0x104   : > { %1555 = vmatprep.subr.bf16.mxu0 %v1223_v63  ;;  %1760 = vmatprep.subr.bf16.mxu1 %v1225_v0  ;;  %v1002_v63 = vld [vmem:[%s2742_s18 + $0x2e0] sm:$0xff]  ;;  %v1004_v0 = vld [vmem:[%s2742_s18 + $0x2f0] sm:$0xff]  ;;  %v1283_v55 = vunpack.c.h.s8.bf16 %v1015_v43  ;;  %v1285_v56 = vunpack.c.h.s8.bf16 %v1017_v44 }
 0x105   : > { %v1258_v11 = vunpack.c.h.s8.bf16 %v1002_v63  ;;  %v1260_v12 = vunpack.c.h.s8.bf16 %v1004_v0 }
 0x107   : > { %1556 = vmatpush1.bf16.msra.mxu0 %v1222_v3  ;;  %1761 = vmatpush1.bf16.msra.mxu1 %v1224_v4  ;;  %v1254_v3 = vunpack.c.l.s8.bf16 %v1002_v63  ;;  %v1256_v4 = vunpack.c.l.s8.bf16 %v1004_v0  ;;  %v1018_v63 = vld [vmem:[%s2742_s18 + $0x360] sm:$0xff]  ;;  %v1020_v0 = vld [vmem:[%s2742_s18 + $0x370] sm:$0xff] }
 0x108   : > { %1557 = vmatprep.subr.bf16.mxu0 %v1227_v5  ;;  %1762 = vmatprep.subr.bf16.mxu1 %v1229_v6  ;;  %v811_v5 = vrot.slane %v810_v1, 1  ;;  %v881_v6 = vrot.slane %v880_v2, 1 }
 0x10b   : > { %1558 = vmatpush1.bf16.msra.mxu0 %v1226_v51  ;;  %1763 = vmatpush1.bf16.msra.mxu1 %v1228_v8  ;;  %v1007_v51 = vld [vmem:[%s2742_s18 + $0x308] sm:$0xff]  ;;  %v1009_v8 = vld [vmem:[%s2742_s18 + $0x318] sm:$0xff] }
 0x10c   : > { %1559 = vmatprep.subr.bf16.mxu0 %v1231_v9  ;;  %1764 = vmatprep.subr.bf16.mxu1 %v1233_v10  ;;  %v812_v9 = vadd.f32 %v811_v5, %v810_v1  ;;  %v882_v10 = vadd.f32 %v881_v6, %v880_v2  ;;  %v1286_v1 = vunpack.c.l.s8.bf16 %v1018_v63  ;;  %v1288_v2 = vunpack.c.l.s8.bf16 %v1020_v0 }
 0x10f   : > { %1560 = vmatpush1.bf16.msra.mxu0 %v1230_v13  ;;  %1765 = vmatpush1.bf16.msra.mxu1 %v1232_v14  ;;  %v898_v13 = vpack.c.bf16 %v812_v9, %v812_v9  ;;  %v908_v14 = vpack.c.bf16 %v882_v10, %v882_v10 }
 0x110   : > { %1561 = vmatprep.subr.bf16.mxu0 %v1235_v15  ;;  %1766 = vmatprep.subr.bf16.mxu1 %v1237_v16  ;;  %v1263_v15 = vunpack.c.l.s8.bf16 %v1007_v51  ;;  %v1265_v16 = vunpack.c.l.s8.bf16 %v1009_v8 }
 0x113   : > { %1562 = vmatpush1.bf16.msra.mxu0 %v1234_v19  ;;  %1767 = vmatpush1.bf16.msra.mxu1 %v1236_v20  ;;  %v1418_v19 = vunpack.c.l.b16 %v898_v13  ;;  %v1428_v20 = vunpack.c.l.b16 %v908_v14 }
 0x114   : > { %1563 = vmatprep.subr.bf16.mxu0 %v1239_v34  ;;  %1768 = vmatprep.subr.bf16.mxu1 %v1241_v35  ;;  %v1445_v34 = vpack.c.b16 %v2841_v26, %v2841_v26  ;;  %v1262_v35 = vunpack.c.l.s8.bf16 %v1006_v17  ;;  %v1266_v26 = vunpack.c.h.s8.bf16 %v1006_v17 }
 0x115   : > { %v2930_v22 = vsel %vm1430_vm1, %v1428_v20, %v1418_v19  ;;  %v1027_v19 = vld [vmem:[%s2742_s18 + $0x3a8] sm:$0xff]  ;;  %v1029_v20 = vld [vmem:[%s2742_s18 + $0x3b8] sm:$0xff] }
 0x117   : > { %1564 = vmatpush1.bf16.msra.mxu0 %v1238_v24  ;;  %1769 = vmatpush1.bf16.msra.mxu1 %v1240_v25  ;;  %v1267_v24 = vunpack.c.h.s8.bf16 %v1007_v51  ;;  %v1269_v25 = vunpack.c.h.s8.bf16 %v1009_v8  ;;  %v1290_v51 = vunpack.c.h.s8.bf16 %v1018_v63  ;;  %v1292_v8 = vunpack.c.h.s8.bf16 %v1020_v0 }
 0x118   : > { %1565 = vmatprep.subr.bf16.mxu0 %v1243_v28  ;;  %1770 = vmatprep.subr.bf16.mxu1 %v1245_v29  ;;  %v1011_v28 = vld [vmem:[%s2742_s18 + $0x328] sm:$0xff]  ;;  %v1013_v29 = vld [vmem:[%s2742_s18 + $0x338] sm:$0xff] }
 0x119   : > { %v1271_v32 = vunpack.c.l.s8.bf16 %v1011_v28  ;;  %v1275_v39 = vunpack.c.h.s8.bf16 %v1011_v28  ;;  %v1277_v40 = vunpack.c.h.s8.bf16 %v1013_v29  ;;  %v1305_v28 = vunpack.c.l.s8.bf16 %v1029_v20 }
 0x11b   : > { %1566 = vmatpush1.bf16.msra.mxu0 %v1242_v33  ;;  %1771 = vmatpush1.bf16.msra.mxu1 %v1244_v36  ;;  %v1273_v33 = vunpack.c.l.s8.bf16 %v1013_v29  ;;  %v1010_v36 = vld [vmem:[%s2742_s18 + $0x320] sm:$0xff] }
 0x11c   : > { %1567 = vmatprep.subr.bf16.mxu0 %v1247_v37  ;;  %1772 = vmatprep.subr.bf16.mxu1 %v1249_v38  ;;  %v1012_v37 = vld [vmem:[%s2742_s18 + $0x330] sm:$0xff]  ;;  %v1270_v38 = vunpack.c.l.s8.bf16 %v1010_v36  ;;  %v1026_v29 = vld [vmem:[%s2742_s18 + $0x3a0] sm:$0xff] }
 0x11d   : > { %v1272_v27 = vunpack.c.l.s8.bf16 %v1012_v37  ;;  %v1306_v43 = vunpack.c.h.s8.bf16 %v1026_v29 }
 0x11f   : > { %1568 = vmatpush1.bf16.msra.mxu0 %v1246_v45  ;;  %1773 = vmatpush1.bf16.msra.mxu1 %v1248_v46  ;;  %v1274_v45 = vunpack.c.h.s8.bf16 %v1010_v36  ;;  %v1276_v46 = vunpack.c.h.s8.bf16 %v1012_v37  ;;  %v1307_v36 = vunpack.c.h.s8.bf16 %v1027_v19  ;;  %v1309_v37 = vunpack.c.h.s8.bf16 %v1029_v20 }
 0x120   : > { %1569 = vmatprep.subr.bf16.mxu0 %v1251_v49  ;;  %1774 = vmatprep.subr.bf16.mxu1 %v1253_v52  ;;  %v1014_v49 = vld [vmem:[%s2742_s18 + $0x340] sm:$0xff]  ;;  %v1016_v52 = vld [vmem:[%s2742_s18 + $0x350] sm:$0xff] }
 0x121   : > { %v1278_v53 = vunpack.c.l.s8.bf16 %v1014_v49  ;;  %v1280_v54 = vunpack.c.l.s8.bf16 %v1016_v52  ;;  %v1282_v59 = vunpack.c.h.s8.bf16 %v1014_v49  ;;  %v1284_v60 = vunpack.c.h.s8.bf16 %v1016_v52 }
 0x123   : > { %1570 = vmatpush1.bf16.msra.mxu0 %v1250_v57  ;;  %1775 = vmatpush1.bf16.msra.mxu1 %v1252_v58  ;;  %v1019_v57 = vld [vmem:[%s2742_s18 + $0x368] sm:$0xff]  ;;  %v1021_v58 = vld [vmem:[%s2742_s18 + $0x378] sm:$0xff] }
 0x124   : > { %1571 = vmatprep.subr.bf16.mxu0 %v1255_v61  ;;  %1776 = vmatprep.subr.bf16.mxu1 %v1257_v62  ;;  %v1287_v61 = vunpack.c.l.s8.bf16 %v1019_v57  ;;  %v1289_v62 = vunpack.c.l.s8.bf16 %v1021_v58  ;;  %v1291_v5 = vunpack.c.h.s8.bf16 %v1019_v57  ;;  %v1293_v6 = vunpack.c.h.s8.bf16 %v1021_v58  ;;  %v1035_v57 = vld [vmem:[%s2742_s18 + $0x3e8] sm:$0xff]  ;;  %v1037_v58 = vld [vmem:[%s2742_s18 + $0x3f8] sm:$0xff] }
 0x125   : > { %v1319_v63 = vunpack.c.l.s8.bf16 %v1035_v57  ;;  %v1321_v0 = vunpack.c.l.s8.bf16 %v1037_v58 }
 0x127   : > { %1572 = vmatpush1.bf16.msra.mxu0 %v1254_v3  ;;  %1777 = vmatpush1.bf16.msra.mxu1 %v1256_v4  ;;  %v733_v3 = vcombine.high %v2911_v41, %v2911_v41  ;;  %v738_v4 = vcombine.high %v2913_v42, %v2913_v42 }
 0x128   : > { %1573 = vmatprep.subr.bf16.mxu0 %v1259_v7  ;;  %1778 = vmatprep.subr.bf16.mxu1 %v1261_v50  ;;  %v1023_v7 = vld [vmem:[%s2742_s18 + $0x388] sm:$0xff]  ;;  %v1025_v50 = vld [vmem:[%s2742_s18 + $0x398] sm:$0xff] }
 0x129   : > { %v813_v9 = vsel %vm749_vm0, %v733_v3, 0.0  ;;  %v883_v10 = vsel %vm749_vm0, %v738_v4, 0.0  ;;  %v1295_v41 = vunpack.c.l.s8.bf16 %v1023_v7  ;;  %v1297_v42 = vunpack.c.l.s8.bf16 %v1025_v50 }
 0x12a   : > { %v814_v13 = vrot.slane %v813_v9, 4  ;;  %v884_v14 = vrot.slane %v883_v10, 4  ;;  %v1299_v17 = vunpack.c.h.s8.bf16 %v1023_v7  ;;  %v1301_v18 = vunpack.c.h.s8.bf16 %v1025_v50 }
 0x12b   : > { %1574 = vmatpush1.bf16.msra.mxu0 %v1258_v11  ;;  %1779 = vmatpush1.bf16.msra.mxu1 %v1260_v12  ;;  %v1022_v11 = vld [vmem:[%s2742_s18 + $0x380] sm:$0xff]  ;;  %v1024_v12 = vld [vmem:[%s2742_s18 + $0x390] sm:$0xff]  ;;  %v1323_v7 = vunpack.c.h.s8.bf16 %v1035_v57  ;;  %v1325_v50 = vunpack.c.h.s8.bf16 %v1037_v58 }
 0x12c   : > { %1584 = vmatprep.subr.bf16.mxu0 %v1263_v15  ;;  %1789 = vmatprep.subr.bf16.mxu1 %v1265_v16  ;;  %v1294_v15 = vunpack.c.l.s8.bf16 %v1022_v11  ;;  %v1296_v16 = vunpack.c.l.s8.bf16 %v1024_v12  ;;  %v1050_v57 = vld [vmem:[%s2742_s18 + $0x460] sm:$0xff]  ;;  %v1052_v58 = vld [vmem:[%s2742_s18 + $0x470] sm:$0xff] }
 0x12e   : > { %1576 = vmatmul.mubr.bf16.vlgmr.msra.gmra.mrb[0].mxu0 %v1445_v34  ;;  %1781 = vmatmul.mubr.bf16.vlgmr.msra.gmra.mrb[0].mxu1 %v1445_v34  ;;  %v815_v34 = vadd.f32 %v814_v13, %v813_v9  ;;  %v1038_v13 = vld [vmem:[%s2742_s18 + $0x400] sm:$0xff] }
 0x12f   : > { %1585 = vmatpush1.bf16.msra.mxu0 %v1262_v35  ;;  %1790 = vmatpush1.bf16.msra.mxu1 %v1264_v21  ;;  %v885_v35 = vadd.f32 %v884_v14, %v883_v10  ;;  %v1298_v21 = vunpack.c.h.s8.bf16 %v1022_v11  ;;  %v1040_v14 = vld [vmem:[%s2742_s18 + $0x410] sm:$0xff] }
 0x130   : > { %1586 = vmatprep.subr.bf16.mxu0 %v1267_v24  ;;  %1791 = vmatprep.subr.bf16.mxu1 %v1269_v25  ;;  %v1300_v24 = vunpack.c.h.s8.bf16 %v1024_v12  ;;  %v1303_v25 = vunpack.c.l.s8.bf16 %v1027_v19 }
 0x131   : > { %1616 = vmatprep.mubr.bf16.mxu0 %v1448_v23  ;;  %1821 = vmatprep.mubr.bf16.mxu1 %v1448_v23  ;;  %v1028_v23 = vld [vmem:[%s2742_s18 + $0x3b0] sm:$0xff] }
 0x132   : > { %v1308_v44 = vunpack.c.h.s8.bf16 %v1028_v23 }
 0x133   : > { %1587 = vmatpush1.bf16.msra.mxu0 %v1266_v26  ;;  %1792 = vmatpush1.bf16.msra.mxu1 %v1268_v31  ;;  %v816_v26 = vrot.slane %v815_v34, 2  ;;  %v886_v31 = vrot.slane %v885_v35, 2 }
 0x134   : > { %1588 = vmatprep.subr.bf16.mxu0 %v1271_v32  ;;  %1793 = vmatprep.subr.bf16.mxu1 %v1273_v33  ;;  %v1302_v32 = vunpack.c.l.s8.bf16 %v1026_v29  ;;  %v1304_v33 = vunpack.c.l.s8.bf16 %v1028_v23  ;;  %v1042_v29 = vld [vmem:[%s2742_s18 + $0x420] sm:$0xff]  ;;  %v1044_v23 = vld [vmem:[%s2742_s18 + $0x430] sm:$0xff] }
 0x137   : > { %1589 = vmatpush1.bf16.msra.mxu0 %v1270_v38  ;;  %1794 = vmatpush1.bf16.msra.mxu1 %v1272_v27  ;;  %v1031_v38 = vld [vmem:[%s2742_s18 + $0x3c8] sm:$0xff]  ;;  %v1033_v27 = vld [vmem:[%s2742_s18 + $0x3d8] sm:$0xff] }
 0x138   : > { %1590 = vmatprep.subr.bf16.mxu0 %v1275_v39  ;;  %1795 = vmatprep.subr.bf16.mxu1 %v1277_v40  ;;  %v817_v39 = vadd.f32 %v816_v26, %v815_v34  ;;  %v887_v40 = vadd.f32 %v886_v31, %v885_v35  ;;  %v1043_v34 = vld [vmem:[%s2742_s18 + $0x428] sm:$0xff]  ;;  %v1045_v35 = vld [vmem:[%s2742_s18 + $0x438] sm:$0xff]  ;;  %v1334_v26 = vunpack.c.l.s8.bf16 %v1042_v29  ;;  %v1336_v31 = vunpack.c.l.s8.bf16 %v1044_v23 }
 0x13a   : > { %v818_v49 = vrot.slane %v817_v39, 1  ;;  %v888_v52 = vrot.slane %v887_v40, 1 }
 0x13b   : > { %1591 = vmatpush1.bf16.msra.mxu0 %v1274_v45  ;;  %1796 = vmatpush1.bf16.msra.mxu1 %v1276_v46  ;;  %v1311_v45 = vunpack.c.l.s8.bf16 %v1031_v38  ;;  %v1313_v46 = vunpack.c.l.s8.bf16 %v1033_v27 }
 0x13c   : > { %1592 = vmatprep.subr.bf16.mxu0 %v1279_v47  ;;  %1797 = vmatprep.subr.bf16.mxu1 %v1281_v48  ;;  %v1030_v47 = vld [vmem:[%s2742_s18 + $0x3c0] sm:$0xff]  ;;  %v1032_v48 = vld [vmem:[%s2742_s18 + $0x3d0] sm:$0xff] }
 0x13f   : > { %1593 = vmatpush1.bf16.msra.mxu0 %v1278_v53  ;;  %1798 = vmatpush1.bf16.msra.mxu1 %v1280_v54  ;;  %v1310_v53 = vunpack.c.l.s8.bf16 %v1030_v47  ;;  %v1312_v54 = vunpack.c.l.s8.bf16 %v1032_v48 }
 0x140   : > { %1594 = vmatprep.subr.bf16.mxu0 %v1283_v55  ;;  %1799 = vmatprep.subr.bf16.mxu1 %v1285_v56  ;;  %v1315_v55 = vunpack.c.h.s8.bf16 %v1031_v38  ;;  %v1317_v56 = vunpack.c.h.s8.bf16 %v1033_v27  ;;  %v1338_v38 = vunpack.c.h.s8.bf16 %v1042_v29  ;;  %v1340_v27 = vunpack.c.h.s8.bf16 %v1044_v23 }
 0x143   : > { %1595 = vmatpush1.bf16.msra.mxu0 %v1282_v59  ;;  %1800 = vmatpush1.bf16.msra.mxu1 %v1284_v60  ;;  %v819_v59 = vadd.f32 %v818_v49, %v817_v39  ;;  %v889_v60 = vadd.f32 %v888_v52, %v887_v40  ;;  %v1051_v49 = vld [vmem:[%s2742_s18 + $0x468] sm:$0xff]  ;;  %v1053_v52 = vld [vmem:[%s2742_s18 + $0x478] sm:$0xff] }
 0x144   : > { %1596 = vmatprep.subr.bf16.mxu0 %v1287_v61  ;;  %1801 = vmatprep.subr.bf16.mxu1 %v1289_v62  ;;  %v1314_v61 = vunpack.c.h.s8.bf16 %v1030_v47  ;;  %v1316_v62 = vunpack.c.h.s8.bf16 %v1032_v48 }
 0x145   : > { %v899_v3 = vpack.c.bf16 %v819_v59, %v819_v59  ;;  %v909_v4 = vpack.c.bf16 %v889_v60, %v889_v60  ;;  %v1350_v59 = vunpack.c.l.s8.bf16 %v1050_v57  ;;  %v1352_v60 = vunpack.c.l.s8.bf16 %v1052_v58 }
 0x147   : > { %1597 = vmatpush1.bf16.msra.mxu0 %v1286_v1  ;;  %1802 = vmatpush1.bf16.msra.mxu1 %v1288_v2  ;;  %v1034_v1 = vld [vmem:[%s2742_s18 + $0x3e0] sm:$0xff]  ;;  %v1036_v2 = vld [vmem:[%s2742_s18 + $0x3f0] sm:$0xff]  ;;  %v1419_v9 = vunpack.c.l.b16 %v899_v3  ;;  %v1429_v10 = vunpack.c.l.b16 %v909_v4 }
 0x148   : > { %1598 = vmatprep.subr.bf16.mxu0 %v1291_v5  ;;  %1803 = vmatprep.subr.bf16.mxu1 %v1293_v6  ;;  %v1318_v5 = vunpack.c.l.s8.bf16 %v1034_v1  ;;  %v1320_v6 = vunpack.c.l.s8.bf16 %v1036_v2 }
 0x14b   : > { %1599 = vmatpush1.bf16.msra.mxu0 %v1290_v51  ;;  %1804 = vmatpush1.bf16.msra.mxu1 %v1292_v8  ;;  %v1039_v51 = vld [vmem:[%s2742_s18 + $0x408] sm:$0xff]  ;;  %v1041_v8 = vld [vmem:[%s2742_s18 + $0x418] sm:$0xff] }
 0x14c   : > { %1600 = vmatprep.subr.bf16.mxu0 %v1295_v41  ;;  %1805 = vmatprep.subr.bf16.mxu1 %v1297_v42  ;;  %v1322_v41 = vunpack.c.h.s8.bf16 %v1034_v1  ;;  %v1324_v42 = vunpack.c.h.s8.bf16 %v1036_v2  ;;  %v1327_v11 = vunpack.c.l.s8.bf16 %v1039_v51  ;;  %v1329_v12 = vunpack.c.l.s8.bf16 %v1041_v8 }
 0x14d   : > { %v1331_v19 = vunpack.c.h.s8.bf16 %v1039_v51  ;;  %v1333_v20 = vunpack.c.h.s8.bf16 %v1041_v8  ;;  %v1354_v1 = vunpack.c.h.s8.bf16 %v1050_v57  ;;  %v1356_v2 = vunpack.c.h.s8.bf16 %v1052_v58 }
 0x14f   : > { %1601 = vmatpush1.bf16.msra.mxu0 %v1294_v15  ;;  %1806 = vmatpush1.bf16.msra.mxu1 %v1296_v16  ;;  %v1447_v15 = vpack.c.b16 %v2882_v30, %v2882_v30  ;;  %v1440_v16 = vsel %vm1430_vm1, %v1429_v10, %v1419_v9  ;;  %v1330_v30 = vunpack.c.h.s8.bf16 %v1038_v13  ;;  %v1059_v9 = vld [vmem:[%s2742_s18 + $0x4a8] sm:$0xff]  ;;  %v1061_v10 = vld [vmem:[%s2742_s18 + $0x4b8] sm:$0xff] }
 0x150   : > { %1602 = vmatprep.subr.bf16.mxu0 %v1299_v17  ;;  %1807 = vmatprep.subr.bf16.mxu1 %v1301_v18  ;;  %v1326_v17 = vunpack.c.l.s8.bf16 %v1038_v13  ;;  %v1328_v18 = vunpack.c.l.s8.bf16 %v1040_v14  ;;  %v1058_v13 = vld [vmem:[%s2742_s18 + $0x4a0] sm:$0xff] }
 0x153   : > { %1603 = vmatpush1.bf16.msra.mxu0 %v1298_v21  ;;  %1808 = vmatpush1.bf16.msra.mxu1 %v1300_v24  ;;  %v1450_v21 = vpack.c.b16 %v1440_v16, %v1440_v16  ;;  %v1332_v24 = vunpack.c.h.s8.bf16 %v1040_v14  ;;  %v1060_v14 = vld [vmem:[%s2742_s18 + $0x4b0] sm:$0xff] }
 0x154   : > { %1604 = vmatprep.subr.bf16.mxu0 %v1303_v25  ;;  %1809 = vmatprep.subr.bf16.mxu1 %v1305_v28  ;;  %v1335_v25 = vunpack.c.l.s8.bf16 %v1043_v34  ;;  %v1337_v28 = vunpack.c.l.s8.bf16 %v1045_v35  ;;  %v1368_v16 = vunpack.c.l.s8.bf16 %v1060_v14 }
 0x157   : > { %1605 = vmatpush1.bf16.msra.mxu0 %v1302_v32  ;;  %1810 = vmatpush1.bf16.msra.mxu1 %v1304_v33  ;;  %v1339_v32 = vunpack.c.h.s8.bf16 %v1043_v34  ;;  %v1341_v33 = vunpack.c.h.s8.bf16 %v1045_v35  ;;  %v1370_v34 = vunpack.c.h.s8.bf16 %v1058_v13  ;;  %v1372_v35 = vunpack.c.h.s8.bf16 %v1060_v14 }
 0x158   : > { %1606 = vmatprep.subr.bf16.mxu0 %v1307_v36  ;;  %1811 = vmatprep.subr.bf16.mxu1 %v1309_v37  ;;  %v1047_v36 = vld [vmem:[%s2742_s18 + $0x448] sm:$0xff]  ;;  %v1049_v37 = vld [vmem:[%s2742_s18 + $0x458] sm:$0xff] }
 0x159   : > { %v1343_v39 = vunpack.c.l.s8.bf16 %v1047_v36  ;;  %v1345_v40 = vunpack.c.l.s8.bf16 %v1049_v37  ;;  %v1347_v47 = vunpack.c.h.s8.bf16 %v1047_v36  ;;  %v1349_v48 = vunpack.c.h.s8.bf16 %v1049_v37 }
 0x15b   : > { %1607 = vmatpush1.bf16.msra.mxu0 %v1306_v43  ;;  %1812 = vmatpush1.bf16.msra.mxu1 %v1308_v44  ;;  %v1046_v43 = vld [vmem:[%s2742_s18 + $0x440] sm:$0xff]  ;;  %v1048_v44 = vld [vmem:[%s2742_s18 + $0x450] sm:$0xff] }
 0x15c   : > { %1608 = vmatprep.subr.bf16.mxu0 %v1311_v45  ;;  %1813 = vmatprep.subr.bf16.mxu1 %v1313_v46  ;;  %v1342_v45 = vunpack.c.l.s8.bf16 %v1046_v43  ;;  %v1344_v46 = vunpack.c.l.s8.bf16 %v1048_v44 }
 0x15f   : > { %1609 = vmatpush1.bf16.msra.mxu0 %v1310_v53  ;;  %1814 = vmatpush1.bf16.msra.mxu1 %v1312_v54  ;;  %v1346_v53 = vunpack.c.h.s8.bf16 %v1046_v43  ;;  %v1348_v54 = vunpack.c.h.s8.bf16 %v1048_v44 }
 0x160   : > { %1610 = vmatprep.subr.bf16.mxu0 %v1315_v55  ;;  %1815 = vmatprep.subr.bf16.mxu1 %v1317_v56  ;;  %v1351_v55 = vunpack.c.l.s8.bf16 %v1051_v49  ;;  %v1353_v56 = vunpack.c.l.s8.bf16 %v1053_v52 }
 0x163   : > { %1611 = vmatpush1.bf16.msra.mxu0 %v1314_v61  ;;  %1816 = vmatpush1.bf16.msra.mxu1 %v1316_v62  ;;  %v1355_v61 = vunpack.c.h.s8.bf16 %v1051_v49  ;;  %v1357_v62 = vunpack.c.h.s8.bf16 %v1053_v52 }
 0x164   : > { %1612 = vmatprep.subr.bf16.mxu0 %v1319_v63  ;;  %1817 = vmatprep.subr.bf16.mxu1 %v1321_v0  ;;  %v1055_v63 = vld [vmem:[%s2742_s18 + $0x488] sm:$0xff]  ;;  %v1057_v0 = vld [vmem:[%s2742_s18 + $0x498] sm:$0xff] }
 0x165   : > { %v1359_v3 = vunpack.c.l.s8.bf16 %v1055_v63  ;;  %v1361_v4 = vunpack.c.l.s8.bf16 %v1057_v0  ;;  %v1363_v51 = vunpack.c.h.s8.bf16 %v1055_v63  ;;  %v1365_v8 = vunpack.c.h.s8.bf16 %v1057_v0 }
 0x167   : > { %1613 = vmatpush1.bf16.msra.mxu0 %v1318_v5  ;;  %1818 = vmatpush1.bf16.msra.mxu1 %v1320_v6  ;;  %v1054_v5 = vld [vmem:[%s2742_s18 + $0x480] sm:$0xff]  ;;  %v1056_v6 = vld [vmem:[%s2742_s18 + $0x490] sm:$0xff] }
 0x168   : > { %1614 = vmatprep.subr.bf16.mxu0 %v1323_v7  ;;  %1819 = vmatprep.subr.bf16.mxu1 %v1325_v50  ;;  %v1358_v7 = vunpack.c.l.s8.bf16 %v1054_v5  ;;  %v1360_v50 = vunpack.c.l.s8.bf16 %v1056_v6 }
 0x16b   : > { %1615 = vmatpush1.bf16.msra.mxu0 %v1322_v41  ;;  %1820 = vmatpush1.bf16.msra.mxu1 %v1324_v42  ;;  %v1362_v41 = vunpack.c.h.s8.bf16 %v1054_v5  ;;  %v1364_v42 = vunpack.c.h.s8.bf16 %v1056_v6 }
 0x16c   : > { %1625 = vmatprep.subr.bf16.mxu0 %v1327_v11  ;;  %1830 = vmatprep.subr.bf16.mxu1 %v1329_v12  ;;  %v1367_v11 = vunpack.c.l.s8.bf16 %v1059_v9  ;;  %v1369_v12 = vunpack.c.l.s8.bf16 %v1061_v10 }
 0x16e   : > { %1617 = vmatmul.mubr.bf16.vlgmr.msra.gmra.mrb[0].mxu0 %v1447_v15  ;;  %1822 = vmatmul.mubr.bf16.vlgmr.msra.gmra.mrb[0].mxu1 %v1447_v15  ;;  %v1366_v15 = vunpack.c.l.s8.bf16 %v1058_v13 }
 0x16f   : > { %1626 = vmatpush1.bf16.msra.mxu0 %v1326_v17  ;;  %1831 = vmatpush1.bf16.msra.mxu1 %v1328_v18  ;;  %v1371_v17 = vunpack.c.h.s8.bf16 %v1059_v9  ;;  %v1373_v18 = vunpack.c.h.s8.bf16 %v1061_v10 }
 0x170   : > { %1627 = vmatprep.subr.bf16.mxu0 %v1331_v19  ;;  %1832 = vmatprep.subr.bf16.mxu1 %v1333_v20  ;;  %v1063_v19 = vld [vmem:[%s2742_s18 + $0x4c8] sm:$0xff]  ;;  %v1065_v20 = vld [vmem:[%s2742_s18 + $0x4d8] sm:$0xff] }
 0x171   : > { %1657 = vmatprep.mubr.bf16.mxu0 %v1450_v21  ;;  %1862 = vmatprep.mubr.bf16.mxu1 %v1450_v21  ;;  %v1375_v21 = vunpack.c.l.s8.bf16 %v1063_v19  ;;  %v1379_v23 = vunpack.c.h.s8.bf16 %v1063_v19  ;;  %v1947_v19 = vld [vmem:[%s3011_s14 + $0x78] sm:$0xff] }
 0x173   : > { %1628 = vmatpush1.bf16.msra.mxu0 %v1330_v30  ;;  %1833 = vmatpush1.bf16.msra.mxu1 %v1332_v24  ;;  %v1377_v30 = vunpack.c.l.s8.bf16 %v1065_v20  ;;  %v1062_v24 = vld [vmem:[%s2742_s18 + $0x4c0] sm:$0xff] }
 0x174   : > { %1629 = vmatprep.subr.bf16.mxu0 %v1335_v25  ;;  %1834 = vmatprep.subr.bf16.mxu1 %v1337_v28  ;;  %v1064_v25 = vld [vmem:[%s2742_s18 + $0x4d0] sm:$0xff]  ;;  %v1374_v28 = vunpack.c.l.s8.bf16 %v1062_v24 }
 0x175   : > { %v1376_v29 = vunpack.c.l.s8.bf16 %v1064_v25  ;;  %v1380_v36 = vunpack.c.h.s8.bf16 %v1064_v25 }
 0x177   : > { %1630 = vmatpush1.bf16.msra.mxu0 %v1334_v26  ;;  %1835 = vmatpush1.bf16.msra.mxu1 %v1336_v31  ;;  %v1381_v26 = vunpack.c.h.s8.bf16 %v1065_v20  ;;  %v1067_v31 = vld [vmem:[%s2742_s18 + $0x4e8] sm:$0xff] }
 0x178   : > { %1631 = vmatprep.subr.bf16.mxu0 %v1339_v32  ;;  %1836 = vmatprep.subr.bf16.mxu1 %v1341_v33  ;;  %v1069_v32 = vld [vmem:[%s2742_s18 + $0x4f8] sm:$0xff]  ;;  %v1378_v33 = vunpack.c.h.s8.bf16 %v1062_v24  ;;  %v1383_v37 = vunpack.c.l.s8.bf16 %v1067_v31  ;;  %v1387_v44 = vunpack.c.h.s8.bf16 %v1067_v31 }
 0x17b   : > { %1632 = vmatpush1.bf16.msra.mxu0 %v1338_v38  ;;  %1837 = vmatpush1.bf16.msra.mxu1 %v1340_v27  ;;  %v1385_v38 = vunpack.c.l.s8.bf16 %v1069_v32  ;;  %v1066_v27 = vld [vmem:[%s2742_s18 + $0x4e0] sm:$0xff] }
 0x17c   : > { %1633 = vmatprep.subr.bf16.mxu0 %v1343_v39  ;;  %1838 = vmatprep.subr.bf16.mxu1 %v1345_v40  ;;  %v1068_v39 = vld [vmem:[%s2742_s18 + $0x4f0] sm:$0xff]  ;;  %v1382_v40 = vunpack.c.l.s8.bf16 %v1066_v27  ;;  %s680_s18 = scalar_lea.vmem %s3062_s2, %s3072_s15 }
 0x17d   : > { %v1384_v43 = vunpack.c.l.s8.bf16 %v1068_v39  ;;  %v1388_v49 = vunpack.c.h.s8.bf16 %v1068_v39  ;;  %v1898_v39 = vld [vmem:[%s685_s21] sm:$0xf] }
 0x17f   : > { %1634 = vmatpush1.bf16.msra.mxu0 %v1342_v45  ;;  %1839 = vmatpush1.bf16.msra.mxu1 %v1344_v46  ;;  %v1389_v45 = vunpack.c.h.s8.bf16 %v1069_v32  ;;  %v1936_v46 = vld [vmem:[%s3011_s14 + $0x20] sm:$0xff] }
 0x180   : > { %1635 = vmatprep.subr.bf16.mxu0 %v1347_v47  ;;  %1840 = vmatprep.subr.bf16.mxu1 %v1349_v48  ;;  %v1944_v47 = vld [vmem:[%s3011_s14 + $0x60] sm:$0xff]  ;;  %v1386_v48 = vunpack.c.h.s8.bf16 %v1066_v27  ;;  %v1956_v52 = vunpack.c.l.s8.bf16 %v1936_v46 }
 0x181   : > { %v1871_v32 = vld [vmem:[%s680_s18] sm:$0xf] }
 0x183   : > { %1636 = vmatpush1.bf16.msra.mxu0 %v1346_v53  ;;  %1841 = vmatpush1.bf16.msra.mxu1 %v1348_v54  ;;  %v1972_v53 = vunpack.c.l.s8.bf16 %v1944_v47  ;;  %v1932_v54 = vld [vmem:[%s3011_s14] sm:$0xff] }
 0x184   : > { %1637 = vmatprep.subr.bf16.mxu0 %v1351_v55  ;;  %1842 = vmatprep.subr.bf16.mxu1 %v1353_v56  ;;  %v1940_v55 = vld [vmem:[%s3011_s14 + $0x40] sm:$0xff]  ;;  %v1449_v56 = vpack.c.b16 %v2930_v22, %v2930_v22  ;;  %v1948_v57 = vunpack.c.l.s8.bf16 %v1932_v54  ;;  %v1949_v63 = vunpack.c.h.s8.bf16 %v1932_v54 }
 0x185   : > { %v1964_v58 = vunpack.c.l.s8.bf16 %v1940_v55  ;;  %v1965_v0 = vunpack.c.h.s8.bf16 %v1940_v55 }
 0x187   : > { %1638 = vmatpush1.bf16.msra.mxu0 %v1350_v59  ;;  %1843 = vmatpush1.bf16.msra.mxu1 %v1352_v60  ;;  %v1957_v59 = vunpack.c.h.s8.bf16 %v1936_v46  ;;  %v1973_v60 = vunpack.c.h.s8.bf16 %v1944_v47 }
 0x188   : > { %1639 = vmatprep.subr.bf16.mxu0 %v1355_v61  ;;  %1844 = vmatprep.subr.bf16.mxu1 %v1357_v62  ;;  %v1937_v61 = vld [vmem:[%s3011_s14 + $0x28] sm:$0xff] }
 0x189   : > { %v1945_v62 = vld [vmem:[%s3011_s14 + $0x68] sm:$0xff]  ;;  %v1958_v22 = vunpack.c.l.s8.bf16 %v1937_v61  ;;  %v1959_v6 = vunpack.c.h.s8.bf16 %v1937_v61 }
 0x18b   : > { %1640 = vmatpush1.bf16.msra.mxu0 %v1354_v1  ;;  %1845 = vmatpush1.bf16.msra.mxu1 %v1356_v2  ;;  %v1974_v1 = vunpack.c.l.s8.bf16 %v1945_v62  ;;  %v1933_v2 = vld [vmem:[%s3011_s14 + $0x8] sm:$0xff] }
 0x18c   : > { %1641 = vmatprep.subr.bf16.mxu0 %v1359_v3  ;;  %1846 = vmatprep.subr.bf16.mxu1 %v1361_v4  ;;  %v1941_v3 = vld [vmem:[%s3011_s14 + $0x48] sm:$0xff]  ;;  %v1950_v4 = vunpack.c.l.s8.bf16 %v1933_v2 }
 0x18d   : > { %v1966_v5 = vunpack.c.l.s8.bf16 %v1941_v3  ;;  %v1967_v9 = vunpack.c.h.s8.bf16 %v1941_v3 }
 0x18f   : > { %1642 = vmatpush1.bf16.msra.mxu0 %v1358_v7  ;;  %1847 = vmatpush1.bf16.msra.mxu1 %v1360_v50  ;;  %v1975_v7 = vunpack.c.h.s8.bf16 %v1945_v62  ;;  %v1938_v50 = vld [vmem:[%s3011_s14 + $0x30] sm:$0xff] }
 0x190   : > { %1643 = vmatprep.subr.bf16.mxu0 %v1363_v51  ;;  %1848 = vmatprep.subr.bf16.mxu1 %v1365_v8  ;;  %v1946_v51 = vld [vmem:[%s3011_s14 + $0x70] sm:$0xff]  ;;  %v1951_v8 = vunpack.c.h.s8.bf16 %v1933_v2  ;;  %v1960_v10 = vunpack.c.l.s8.bf16 %v1938_v50  ;;  %v1961_v14 = vunpack.c.h.s8.bf16 %v1938_v50 }
 0x193   : > { %1644 = vmatpush1.bf16.msra.mxu0 %v1362_v41  ;;  %1849 = vmatpush1.bf16.msra.mxu1 %v1364_v42  ;;  %v1976_v41 = vunpack.c.l.s8.bf16 %v1946_v51  ;;  %v1934_v42 = vld [vmem:[%s3011_s14 + $0x10] sm:$0xff] }
 0x194   : > { %1645 = vmatprep.subr.bf16.mxu0 %v1367_v11  ;;  %1850 = vmatprep.subr.bf16.mxu1 %v1369_v12  ;;  %v1942_v11 = vld [vmem:[%s3011_s14 + $0x50] sm:$0xff]  ;;  %v1952_v12 = vunpack.c.l.s8.bf16 %v1934_v42 }
 0x195   : > { %v1968_v13 = vunpack.c.l.s8.bf16 %v1942_v11 }
 0x197   : > { %1646 = vmatpush1.bf16.msra.mxu0 %v1366_v15  ;;  %1851 = vmatpush1.bf16.msra.mxu1 %v1368_v16  ;;  %v1977_v15 = vunpack.c.h.s8.bf16 %v1946_v51  ;;  %v1953_v16 = vunpack.c.h.s8.bf16 %v1934_v42 }
 0x198   : > { %1647 = vmatprep.subr.bf16.mxu0 %v1371_v17  ;;  %1852 = vmatprep.subr.bf16.mxu1 %v1373_v18  ;;  %v1969_v17 = vunpack.c.h.s8.bf16 %v1942_v11  ;;  %v1939_v18 = vld [vmem:[%s3011_s14 + $0x38] sm:$0xff] }
 0x199   : > { %v1962_v20 = vunpack.c.l.s8.bf16 %v1939_v18  ;;  %v1963_v25 = vunpack.c.h.s8.bf16 %v1939_v18 }
 0x19b   : > { %1648 = vmatpush1.bf16.msra.mxu0 %v1370_v34  ;;  %1853 = vmatpush1.bf16.msra.mxu1 %v1372_v35  ;;  %v1978_v34 = vunpack.c.l.s8.bf16 %v1947_v19  ;;  %v1935_v35 = vld [vmem:[%s3011_s14 + $0x18] sm:$0xff] }
 0x19c   : > { %1649 = vmatprep.subr.bf16.mxu0 %v1375_v21  ;;  %1854 = vmatprep.subr.bf16.mxu1 %v1377_v30  ;;  %v1943_v21 = vld [vmem:[%s3011_s14 + $0x58] sm:$0xff]  ;;  %v1954_v30 = vunpack.c.l.s8.bf16 %v1935_v35 }
 0x19d   : > { %v1970_v24 = vunpack.c.l.s8.bf16 %v1943_v21 }
 0x19f   : > { %1650 = vmatpush1.bf16.msra.mxu0 %v1374_v28  ;;  %1855 = vmatpush1.bf16.msra.mxu1 %v1376_v29  ;;  %v1979_v28 = vunpack.c.h.s8.bf16 %v1947_v19  ;;  %v1955_v29 = vunpack.c.h.s8.bf16 %v1935_v35  ;;  %v2204_v19 = vld [vmem:[%s697_s29] ss:$0 sm:$0xff] }
 0x1a0   : > { %1651 = vmatprep.subr.bf16.mxu0 %v1379_v23  ;;  %1856 = vmatprep.subr.bf16.mxu1 %v1381_v26  ;;  %v1971_v23 = vunpack.c.h.s8.bf16 %v1943_v21  ;;  %v1874_v26 = vlaneseq }
 0x1a2   : > { %v1875_v31 = vshrl.u32 %v1874_v26, 7 }
 0x1a3   : > { %1652 = vmatpush1.bf16.msra.mxu0 %v1378_v33  ;;  %1857 = vmatpush1.bf16.msra.mxu1 %v1380_v36  ;;  %v1872_v33 = vmul.f32 0.25, %v1871_v32 }
 0x1a4   : > { %1653 = vmatprep.subr.bf16.mxu0 %v1383_v37  ;;  %1858 = vmatprep.subr.bf16.mxu1 %v1385_v38  ;;  %v1876_v36 = vsub.s32 0, %v1875_v31  ;;  %v1884_v37 = vsub.s32 2, %v1875_v31  ;;  %v1880_v38 = vsub.s32 1, %v1875_v31  ;;  %v1888_v27 = vsub.s32 3, %v1875_v31 }
 0x1a6   : > { %v1903_v46 = vrot.slane %v1898_v39, %v1876_v36  ;;  %v1911_v47 = vrot.slane %v1898_v39, %v1884_v37 }
 0x1a7   : > { %1654 = vmatpush1.bf16.msra.mxu0 %v1382_v40  ;;  %1859 = vmatpush1.bf16.msra.mxu1 %v1384_v43  ;;  %v1877_v40 = vrot.slane %v1872_v33, %v1876_v36  ;;  %v1885_v43 = vrot.slane %v1872_v33, %v1884_v37 }
 0x1a8   : > { %1655 = vmatprep.subr.bf16.mxu0 %v1387_v44  ;;  %1860 = vmatprep.subr.bf16.mxu1 %v1389_v45  ;;  %v1881_v44 = vrot.slane %v1872_v33, %v1880_v38  ;;  %v1889_v45 = vrot.slane %v1872_v33, %v1888_v27 }
 0x1ab   : > { %1656 = vmatpush1.bf16.msra.mxu0 %v1386_v48  ;;  %1861 = vmatpush1.bf16.msra.mxu1 %v1388_v49 }
 0x1ac   : > { %2209 = vmatprep.subr.bf16.mxu0 %v1956_v52  ;;  %2231 = vmatprep.subr.bf16.mxu1 %v1972_v53  ;;  %v1907_v52 = vrot.slane %v1898_v39, %v1880_v38  ;;  %v1915_v53 = vrot.slane %v1898_v39, %v1888_v27 }
 0x1ae   : > { %1658 = vmatmul.mubr.bf16.vlgmr.msra.gmra.mrb[0].mxu0 %v1449_v56  ;;  %1863 = vmatmul.mubr.bf16.vlgmr.msra.gmra.mrb[0].mxu1 %v1449_v56 }
 0x1af   : > { %2210 = vmatpush3.bf16.msra.mxu0 %v1948_v57  ;;  %2232 = vmatpush3.bf16.msra.mxu1 %v1964_v58 }
 0x1b0   : > { %2211 = vmatprep.subr.bf16.mxu0 %v1957_v59  ;;  %2233 = vmatprep.subr.bf16.mxu1 %v1973_v60 }
 0x1b3   : > { %2212 = vmatpush3.bf16.msra.mxu0 %v1949_v63  ;;  %2234 = vmatpush3.bf16.msra.mxu1 %v1965_v0 }
 0x1b4   : > { %2213 = vmatprep.subr.bf16.mxu0 %v1958_v22  ;;  %2235 = vmatprep.subr.bf16.mxu1 %v1974_v1 }
 0x1b7   : > { %2214 = vmatpush3.bf16.msra.mxu0 %v1950_v4  ;;  %2236 = vmatpush3.bf16.msra.mxu1 %v1966_v5 }
 0x1b8   : > { %2215 = vmatprep.subr.bf16.mxu0 %v1959_v6  ;;  %2237 = vmatprep.subr.bf16.mxu1 %v1975_v7 }
 0x1bb   : > { %2216 = vmatpush3.bf16.msra.mxu0 %v1951_v8  ;;  %2238 = vmatpush3.bf16.msra.mxu1 %v1967_v9 }
 0x1bc   : > { %2217 = vmatprep.subr.bf16.mxu0 %v1960_v10  ;;  %2239 = vmatprep.subr.bf16.mxu1 %v1976_v41 }
 0x1bf   : > { %2218 = vmatpush3.bf16.msra.mxu0 %v1952_v12  ;;  %2240 = vmatpush3.bf16.msra.mxu1 %v1968_v13 }
 0x1c0   : > { %2219 = vmatprep.subr.bf16.mxu0 %v1961_v14  ;;  %2241 = vmatprep.subr.bf16.mxu1 %v1977_v15  ;;  %v2203_v15 = vld [vmem:[%s694_s23] ss:$0 sm:$0xff] }
 0x1c3   : > { %2220 = vmatpush3.bf16.msra.mxu0 %v1953_v16  ;;  %2242 = vmatpush3.bf16.msra.mxu1 %v1969_v17 }
 0x1c4   : > { %2221 = vmatprep.subr.bf16.mxu0 %v1962_v20  ;;  %2243 = vmatprep.subr.bf16.mxu1 %v1978_v34 }
 0x1c7   : > { %2222 = vmatpush3.bf16.msra.mxu0 %v1954_v30  ;;  %2244 = vmatpush3.bf16.msra.mxu1 %v1970_v24 }
 0x1c8   : > { %2223 = vmatprep.subr.bf16.mxu0 %v1963_v25  ;;  %2245 = vmatprep.subr.bf16.mxu1 %v1979_v28 }
 0x1cb   : > { %2224 = vmatpush3.bf16.msra.mxu0 %v1955_v29  ;;  %2246 = vmatpush3.bf16.msra.mxu1 %v1971_v23 }
 0x281   : > { %v1659_v48 = vpop.f32.mrb[0].mxu0  ;;  %v1864_v49 = vpop.f32.mrb[0].mxu1 }
 0x282   : > { %v1894_v54 = vmul.f32 %v1877_v40, %v1659_v48  ;;  %v1896_v55 = vmul.f32 %v1885_v43, %v1864_v49  ;;  %v1661_v56 = vpop.f32.mrb[1].mxu0  ;;  %v1866_v57 = vpop.f32.mrb[1].mxu1 }
 0x283   : > { %v1895_v58 = vmul.f32 %v1881_v44, %v1661_v56  ;;  %v1897_v59 = vmul.f32 %v1889_v45, %v1866_v57  ;;  %v1663_v60 = vpop.f32.mrb[2].mxu0  ;;  %v1868_v61 = vpop.f32.mrb[2].mxu1 }
 0x284   : > { %v1920_v62 = vadd.f32 %v1903_v46, %v1894_v54  ;;  %v1922_v63 = vadd.f32 %v1911_v47, %v1896_v55  ;;  %v1664_v0 = vpop.f32.mrb[3].mxu0  ;;  %v1869_v22 = vpop.f32.mrb[3].mxu1 }
 0x285   : > { %v1921_v1 = vadd.f32 %v1907_v52, %v1895_v58  ;;  %v1923_v2 = vadd.f32 %v1915_v53, %v1897_v59 }
 0x286   : > { %v1924_v3 = vmax.f32 %v1920_v62, 0.0  ;;  %v1926_v4 = vmax.f32 %v1922_v63, 0.0 }
 0x287   : > { %v1925_v5 = vmax.f32 %v1921_v1, 0.0  ;;  %v1927_v6 = vmax.f32 %v1923_v2, 0.0 }
 0x288   : > { %v1928_v51 = vpack.c.bf16 %v1924_v3, %v1924_v3  ;;  %v1930_v8 = vpack.c.bf16 %v1926_v4, %v1926_v4 }
 0x289   : > { %v1929_v7 = vpack.c.bf16 %v1925_v5, %v1925_v5  ;;  %v1931_v50 = vpack.c.bf16 %v1927_v6, %v1927_v6 }
 0x28b   : > { %2012 = vmatprep.mubr.bf16.mxu0 %v1929_v7  ;;  %2052 = vmatprep.mubr.bf16.mxu1 %v1931_v50 }
 0x28c   : > { %2013 = vmatmul.mubr.bf16.vlgmr.msra.gmra.mrb[4].mxu0 %v1928_v51  ;;  %2053 = vmatmul.mubr.bf16.vlgmr.msra.gmra.mrb[4].mxu1 %v1930_v8 }
 0x35f   : > { %v2225_v9 = vpop.f32.mrb[4].mxu0  ;;  %v2247_v10 = vpop.f32.mrb[4].mxu1 }
 0x360   : > { %v2226_v41 = vpop.f32.mrb[5].mxu0  ;;  %v2248_v42 = vpop.f32.mrb[5].mxu1 }
 0x361   : > { %v2227_v11 = vadd.f32 %v2226_v41, %v2225_v9  ;;  %v2249_v12 = vadd.f32 %v2248_v42, %v2247_v10  ;;  %v2228_v13 = vpop.f32.mrb[6].mxu0  ;;  %v2250_v14 = vpop.f32.mrb[6].mxu1 }
 0x362   : > { %v2229_v16 = vpop.f32.mrb[7].mxu0  ;;  %v2251_v17 = vpop.f32.mrb[7].mxu1 }
 0x363   : > { %v2055_v18 = vadd.f32 %v2249_v12, %v2227_v11 }
 0x365   : > { %v2067_v20 = vmul.f32 %v2203_v15, %v2055_v18 }
 0x367   : > { %v2075_v34 = vadd.f32 %v2204_v19, %v2067_v20 }
 0x369   : > { %v2076_v35 = vsub.f32 0.0, %v2075_v34 }
 0x36b   : > { %v2077_v21 = vmul.f32 1.442695, %v2076_v35 }
 0x36d   : > { %2311 = vpow2.f32 %v2077_v21 }
 0x377   : > { %v2312_v30 = vpop.eup %2311 }
 0x378   : > { %v2079_v24 = vadd.f32 1.0, %v2312_v30 }
 0x37a   : > { %2313 = vrcp.f32 %v2079_v24 }
 0x384   : > { %v2314_v25 = vpop.eup %2313 }
 0x385   : > { %v2081_v28 = vmax.f32 %v2314_v25, 0.0 }
 0x387   : > { %v2082_v29 = vmin.f32 %v2081_v28, 1.0 }
 0x389   : > { %2083 = vst [vmem:[%s701_s12] sm:$0x3] %v2082_v29 }
 0x38a PF: > { %p14_p10 = scmp.ge.s32.totalorder %s2398_s28, 9   ;;  %s3068_s24 = smov %s2333_s25 }
 0x38b   : > { %s3069_s25 = smov %s2407_s8  ;;  %s3070_s26 = smov %s2398_s28 }
 0x38c   :  { %16 = sbr.rel (!%p14_p10) target bundleno = 2 (0x2), region = 121 }

</bundles_post_ra>
